<compile_context>
chip_gen: v7x
topology: tpu7x:2x2x1
jax: 0.10.0
libtpu: 0.0.40
codegen_flags: <defaults>
</compile_context>

<pallas_src>
import functools
import math

import jax
import jax.numpy as jnp
import numpy as np
from jax.experimental import pallas as pl
from jax.experimental.pallas import tpu as pltpu


def _attn_pool_kernel(x_ref, posr_ref, pos0_ref,
                      wqT_ref, wkT_ref, wvT_ref,
                      bq_ref, bk_ref, bv_ref,
                      selT_ref, sel_ref, wcT_ref, bc_ref,
                      mseg_ref, erep_ref,
                      out_ref, *, head_ch, bblk, t0):
    """One grid step = `bblk` batches, tokens-as-rows layout. R = bblk * t0 rows."""
    f32 = jnp.float32
    scale2 = 1.0 / math.sqrt(head_ch)        # == (ch ** -0.25) applied to both q and k

    x = x_ref[...]                            # [R, C]  spatial tokens (rows), channels (lanes)
    posr = posr_ref[...]                      # [R, C]  pos emb, spatial tokens (pre-tiled per block)
    pos0 = pos0_ref[...]                      # [1, C]  pos emb, mean token
    wqT, wkT, wvT = wqT_ref[...], wkT_ref[...], wvT_ref[...]   # [C, C] each (pre-transposed)
    bq, bk, bv = bq_ref[...], bk_ref[...], bv_ref[...]         # [1, C] each
    selT = selT_ref[...]                      # [C, H]  one-hot: channel c -> head h
    sel = sel_ref[...]                        # [H, C]
    wcT, bc = wcT_ref[...], bc_ref[...]       # [C, Dout], [1, Dout]
    mseg = mseg_ref[...]                      # [bblk, R]  1 where row belongs to batch b
    erep = erep_ref[...]                      # [R, bblk]  == mseg.T (row -> its batch)
    nh = sel.shape[0]

    # per-batch mean token (over raw x) + positional embeddings
    mean = jnp.dot(mseg, x, preferred_element_type=f32) * (1.0 / t0)   # [bblk, C]
    tok0 = mean + pos0                                                  # [bblk, C]
    tokr = x + posr                                                     # [R, C]

    # qkv_proj (1x1 conv == channel matmul); Q only for the mean token.
    kr = jnp.dot(tokr, wkT, preferred_element_type=f32) + bk            # [R, C]
    vr = jnp.dot(tokr, wvT, preferred_element_type=f32) + bv            # [R, C]
    q0 = jnp.dot(tok0, wqT, preferred_element_type=f32) + bq            # [bblk, C]
    k0 = jnp.dot(tok0, wkT, preferred_element_type=f32) + bk            # [bblk, C]
    v0 = jnp.dot(tok0, wvT, preferred_element_type=f32) + bv            # [bblk, C]

    # scores for query = mean token, all heads & batches at once (scale^2 folded into q)
    q0s = q0 * scale2                                                   # [bblk, C]
    q0_rows = jnp.dot(erep, q0s, preferred_element_type=f32)            # [R, C] (batch-matched q)
    s_r = jnp.dot(q0_rows * kr, selT, preferred_element_type=f32)       # [R, H]
    s_0 = jnp.dot(q0s * k0, selT, preferred_element_type=f32)           # [bblk, H]

    # numerically-stable softmax over T = 1 + T0 scores per (batch, head), f32
    seg_max = jnp.max(s_r.reshape(bblk, t0, nh), axis=1)                # [bblk, H]
    m = jnp.maximum(seg_max, s_0)                                       # [bblk, H]
    e_r = jnp.exp(s_r - jnp.dot(erep, m, preferred_element_type=f32))   # [R, H] (unnormalised)
    e_0 = jnp.exp(s_0 - m)                                              # [bblk, H]
    denom = jnp.dot(mseg, e_r, preferred_element_type=f32) + e_0        # [bblk, H]
    inv = 1.0 / denom                                                   # exact (matches 1e-4 ref)

    # attended token 0: broadcast per-head weights to channels, reduce against V,
    # normalise once on the tiny [bblk, C] result.
    pc_r = jnp.dot(e_r, sel, preferred_element_type=f32)                # [R, C]
    pc_0 = jnp.dot(e_0, sel, preferred_element_type=f32)                # [bblk, C]
    acc = jnp.dot(mseg, pc_r * vr, preferred_element_type=f32) + pc_0 * v0   # [bblk, C]
    a0 = acc * jnp.dot(inv, sel, preferred_element_type=f32)            # [bblk, C]

    # c_proj on the single attended token per batch -> lane-dense [bblk, Dout] slab
    out_ref[...] = (jnp.dot(a0, wcT, preferred_element_type=f32) + bc).astype(out_ref.dtype)


def _choose_block_batches(batch, t0, ch, vmem_budget_bytes=2 << 20):
    """Largest batch block that divides `batch`, keeps the x tile under budget, and
    keeps block shapes (8,128)-legal when the block is smaller than the full batch."""
    per_batch_bytes = t0 * ch * 4
    cap = max(1, vmem_budget_bytes // per_batch_bytes)
    if batch <= cap:
        return batch
    best = None
    for d in range(8, cap + 1, 8):            # multiples of 8 -> legal out/x blocks
        if batch % d == 0:
            best = d
    return best if best is not None else batch


def attention_pool_2d(x, pos_emb, w_qkv, b_qkv, w_c, b_c, *, num_heads, block_batches=None):
    """x: [B, C, H, W]; pos_emb: [C, H*W+1]; w_qkv: [3C, C]; b_qkv: [3C];
       w_c: [Dout, C]; b_c: [Dout].  Returns [B, Dout] == AttentionPool2d.forward(x)."""
    B, C, H, W = x.shape
    T0 = H * W
    Dout = w_c.shape[0]
    assert C % num_heads == 0
    head_ch = C // num_heads
    f32 = jnp.float32

    bblk = block_batches if block_batches is not None else _choose_block_batches(B, T0, C)
    assert B % bblk == 0
    assert bblk == B or (bblk % 8 == 0), "batch block must be a multiple of 8 (or the full batch)"
    grid = (B // bblk,)
    R = bblk * T0

    # tokens-as-rows layout: channels lane-dense, enables batched matmuls per block.
    x_rows = jnp.transpose(x.astype(f32).reshape(B, C, T0), (0, 2, 1)).reshape(B * T0, C)

    pos = pos_emb.astype(f32)
    pos0_row = pos[:, 0:1].T                        # [1, C]
    posr_rows = jnp.tile(pos[:, 1:].T, (bblk, 1))   # [R, C] (per-block constant)

    wqkv = w_qkv.astype(f32)
    wqT, wkT, wvT = wqkv[0:C].T, wqkv[C:2 * C].T, wqkv[2 * C:3 * C].T   # [C, C]
    bqkv = b_qkv.astype(f32)
    bq = bqkv[0:C].reshape(1, C)
    bk = bqkv[C:2 * C].reshape(1, C)
    bv = bqkv[2 * C:3 * C].reshape(1, C)

    wcT = w_c.astype(f32).T                         # [C, Dout] -> lane-dense output rows
    bc2 = b_c.astype(f32).reshape(1, Dout)

    # one-hot "channel c belongs to head h" matrix (and its transpose)
    head_of_c = jnp.arange(C, dtype=jnp.int32) // head_ch
    sel = (head_of_c[None, :] == jnp.arange(num_heads, dtype=jnp.int32)[:, None]).astype(f32)
    selT = sel.T

    # segment-sum / row->batch one-hot matrices (resident constants, MXU-friendly)
    row_batch = jnp.arange(R, dtype=jnp.int32) // T0
    mseg = (row_batch[None, :] == jnp.arange(bblk, dtype=jnp.int32)[:, None]).astype(f32)  # [bblk, R]
    erep = mseg.T                                                                           # [R, bblk]

    kernel = functools.partial(_attn_pool_kernel, head_ch=head_ch, bblk=bblk, t0=T0)

    def const(shape):
        return pl.BlockSpec(shape, lambda i: (0, 0))

    out = pl.pallas_call(
        kernel,
        out_shape=jax.ShapeDtypeStruct((B, Dout), f32),
        grid_spec=pltpu.PrefetchScalarGridSpec(
            num_scalar_prefetch=0,
            grid=grid,
            in_specs=[
                pl.BlockSpec((R, C), lambda i: (i, 0)),   # x rows (batch block, pipelined)
                const((R, C)),                            # pos emb, spatial tokens (tiled)
                const((1, C)),                            # pos emb, mean token
                const((C, C)),                            # W_q^T
                const((C, C)),                            # W_k^T
                const((C, C)),                            # W_v^T
                const((1, C)),                            # b_q
                const((1, C)),                            # b_k
                const((1, C)),                            # b_v
                const((C, num_heads)),                    # head selector^T
                const((num_heads, C)),                    # head selector
                const((C, Dout)),                         # W_c^T
                const((1, Dout)),                         # b_c
                const((bblk, R)),                         # segment-sum matrix
                const((R, bblk)),                         # row -> batch one-hot
            ],
            out_specs=pl.BlockSpec((bblk, Dout), lambda i: (i, 0)),
        ),
        compiler_params=pltpu.CompilerParams(
            dimension_semantics=("parallel",),            # batch blocks are independent
        ),
    )(x_rows, posr_rows, pos0_row, wqT, wkT, wvT, bq, bk, bv,
      selT, sel, wcT, bc2, mseg, erep)
    return out                                            # [B, Dout]


def _reference(x, pos, wqkv, bqkv, wc, bc, num_heads):
    # Pure-JAX re-implementation of AttentionPool2d.forward for verification.
    B, C, H, W = x.shape
    t = x.reshape(B, C, -1)
    t = jnp.concatenate([t.mean(axis=-1, keepdims=True), t], axis=-1)
    t = t + pos[None]
    qkv = jnp.einsum('oc,bct->bot', wqkv, t) + bqkv[None, :, None]
    ch = C // num_heads
    q, k, v = jnp.split(qkv, 3, axis=1)
    q = q.reshape(B * num_heads, ch, -1)
    k = k.reshape(B * num_heads, ch, -1)
    v = v.reshape(B * num_heads, ch, -1)
    scale = 1.0 / math.sqrt(math.sqrt(ch))
    w = jnp.einsum('bct,bcs->bts', q * scale, k * scale)
    w = jax.nn.softmax(w, axis=-1)
    a = jnp.einsum('bts,bcs->bct', w, v).reshape(B, C, -1)
    out = jnp.einsum('oc,bct->bot', wc, a) + bc[None, :, None]
    return out[:, :, 0]


if __name__ == "__main__":
    # Module hyperparameters (small, consistent with AttentionPool2d.__init__)
    spacial_dim = 4
    embed_dim = 8
    num_heads_channels = 4
    output_dim = 8
    num_heads = embed_dim // num_heads_channels
    batch = 16          # with block_batches=8 -> grid=(2,), exercises batch blocking

    T = spacial_dim ** 2 + 1
    key = jax.random.PRNGKey(0)
    kx, kpos, kw1, kb1, kw2, kb2 = jax.random.split(key, 6)

    # Deterministic synthetic parameters (shapes from __init__; 1x1 conv weights squeezed)
    x = jax.random.normal(kx, (batch, embed_dim, spacial_dim, spacial_dim), jnp.float32)
    pos_emb = jax.random.normal(kpos, (embed_dim, T), jnp.float32) / embed_dim ** 0.5
    w_qkv = jax.random.normal(kw1, (3 * embed_dim, embed_dim), jnp.float32) / embed_dim ** 0.5
    b_qkv = jax.random.normal(kb1, (3 * embed_dim,), jnp.float32) * 0.1
    w_c = jax.random.normal(kw2, (output_dim, embed_dim), jnp.float32) / embed_dim ** 0.5
    b_c = jax.random.normal(kb2, (output_dim,), jnp.float32) * 0.1

    out = attention_pool_2d(x, pos_emb, w_qkv, b_qkv, w_c, b_c,
                            num_heads=num_heads, block_batches=8)
    out = jax.block_until_ready(out)

    ref = _reference(x, pos_emb, w_qkv, b_qkv, w_c, b_c, num_heads)
    np.testing.assert_allclose(np.asarray(out), np.asarray(ref), rtol=1e-4, atol=1e-4)

    print("KERNEL_OK")
</pallas_src>

<mosaic_0001>
module attributes {stable_mosaic.version = 11 : i64} {
  func.func @_attn_pool_kernel(%arg0: i32, %arg1: memref<128x8xf32, #tpu.memory_space<vmem>>, %arg2: memref<128x8xf32, #tpu.memory_space<vmem>>, %arg3: memref<1x8xf32, #tpu.memory_space<vmem>>, %arg4: memref<8x8xf32, #tpu.memory_space<vmem>>, %arg5: memref<8x8xf32, #tpu.memory_space<vmem>>, %arg6: memref<8x8xf32, #tpu.memory_space<vmem>>, %arg7: memref<1x8xf32, #tpu.memory_space<vmem>>, %arg8: memref<1x8xf32, #tpu.memory_space<vmem>>, %arg9: memref<1x8xf32, #tpu.memory_space<vmem>>, %arg10: memref<8x2xf32, #tpu.memory_space<vmem>>, %arg11: memref<2x8xf32, #tpu.memory_space<vmem>>, %arg12: memref<8x8xf32, #tpu.memory_space<vmem>>, %arg13: memref<1x8xf32, #tpu.memory_space<vmem>>, %arg14: memref<8x128xf32, #tpu.memory_space<vmem>>, %arg15: memref<128x8xf32, #tpu.memory_space<vmem>>, %arg16: memref<8x8xf32, #tpu.memory_space<vmem>>) attributes {dimension_semantics = [#tpu.dimension_semantics<parallel>], iteration_bounds = array<i64: 2>, scalar_prefetch = 0 : i64, scratch_operands = 0 : i64, tpu.core_type = #tpu.core_type<tc>, window_params = [{transform_indices = @transform_0, window_bounds = array<i64: 128, 8>}, {pipeline_mode = #tpu.pipeline_mode<synchronous>, transform_indices = @transform_1, window_bounds = array<i64: 128, 8>}, {pipeline_mode = #tpu.pipeline_mode<synchronous>, transform_indices = @transform_2, window_bounds = array<i64: 1, 8>}, {pipeline_mode = #tpu.pipeline_mode<synchronous>, transform_indices = @transform_3, window_bounds = array<i64: 8, 8>}, {pipeline_mode = #tpu.pipeline_mode<synchronous>, transform_indices = @transform_4, window_bounds = array<i64: 8, 8>}, {pipeline_mode = #tpu.pipeline_mode<synchronous>, transform_indices = @transform_5, window_bounds = array<i64: 8, 8>}, {pipeline_mode = #tpu.pipeline_mode<synchronous>, transform_indices = @transform_6, window_bounds = array<i64: 1, 8>}, {pipeline_mode = #tpu.pipeline_mode<synchronous>, transform_indices = @transform_7, window_bounds = array<i64: 1, 8>}, {pipeline_mode = #tpu.pipeline_mode<synchronous>, transform_indices = @transform_8, window_bounds = array<i64: 1, 8>}, {pipeline_mode = #tpu.pipeline_mode<synchronous>, transform_indices = @transform_9, window_bounds = array<i64: 8, 2>}, {pipeline_mode = #tpu.pipeline_mode<synchronous>, transform_indices = @transform_10, window_bounds = array<i64: 2, 8>}, {pipeline_mode = #tpu.pipeline_mode<synchronous>, transform_indices = @transform_11, window_bounds = array<i64: 8, 8>}, {pipeline_mode = #tpu.pipeline_mode<synchronous>, transform_indices = @transform_12, window_bounds = array<i64: 1, 8>}, {pipeline_mode = #tpu.pipeline_mode<synchronous>, transform_indices = @transform_13, window_bounds = array<i64: 8, 128>}, {pipeline_mode = #tpu.pipeline_mode<synchronous>, transform_indices = @transform_14, window_bounds = array<i64: 128, 8>}, {transform_indices = @transform_15, window_bounds = array<i64: 8, 8>}]} {
    %c0 = arith.constant 0 : index
    %c0_0 = arith.constant 0 : index
    %0 = vector.load %arg1[%c0, %c0_0] : memref<128x8xf32, #tpu.memory_space<vmem>>, vector<128x8xf32>
    %c0_1 = arith.constant 0 : index
    %c0_2 = arith.constant 0 : index
    %1 = vector.load %arg2[%c0_1, %c0_2] : memref<128x8xf32, #tpu.memory_space<vmem>>, vector<128x8xf32>
    %c0_3 = arith.constant 0 : index
    %c0_4 = arith.constant 0 : index
    %2 = vector.load %arg3[%c0_3, %c0_4] : memref<1x8xf32, #tpu.memory_space<vmem>>, vector<1x8xf32>
    %c0_5 = arith.constant 0 : index
    %c0_6 = arith.constant 0 : index
    %3 = vector.load %arg4[%c0_5, %c0_6] : memref<8x8xf32, #tpu.memory_space<vmem>>, vector<8x8xf32>
    %c0_7 = arith.constant 0 : index
    %c0_8 = arith.constant 0 : index
    %4 = vector.load %arg5[%c0_7, %c0_8] : memref<8x8xf32, #tpu.memory_space<vmem>>, vector<8x8xf32>
    %c0_9 = arith.constant 0 : index
    %c0_10 = arith.constant 0 : index
    %5 = vector.load %arg6[%c0_9, %c0_10] : memref<8x8xf32, #tpu.memory_space<vmem>>, vector<8x8xf32>
    %c0_11 = arith.constant 0 : index
    %c0_12 = arith.constant 0 : index
    %6 = vector.load %arg7[%c0_11, %c0_12] : memref<1x8xf32, #tpu.memory_space<vmem>>, vector<1x8xf32>
    %c0_13 = arith.constant 0 : index
    %c0_14 = arith.constant 0 : index
    %7 = vector.load %arg8[%c0_13, %c0_14] : memref<1x8xf32, #tpu.memory_space<vmem>>, vector<1x8xf32>
    %c0_15 = arith.constant 0 : index
    %c0_16 = arith.constant 0 : index
    %8 = vector.load %arg9[%c0_15, %c0_16] : memref<1x8xf32, #tpu.memory_space<vmem>>, vector<1x8xf32>
    %c0_17 = arith.constant 0 : index
    %c0_18 = arith.constant 0 : index
    %9 = vector.load %arg10[%c0_17, %c0_18] : memref<8x2xf32, #tpu.memory_space<vmem>>, vector<8x2xf32>
    %c0_19 = arith.constant 0 : index
    %c0_20 = arith.constant 0 : index
    %10 = vector.load %arg11[%c0_19, %c0_20] : memref<2x8xf32, #tpu.memory_space<vmem>>, vector<2x8xf32>
    %c0_21 = arith.constant 0 : index
    %c0_22 = arith.constant 0 : index
    %11 = vector.load %arg12[%c0_21, %c0_22] : memref<8x8xf32, #tpu.memory_space<vmem>>, vector<8x8xf32>
    %c0_23 = arith.constant 0 : index
    %c0_24 = arith.constant 0 : index
    %12 = vector.load %arg13[%c0_23, %c0_24] : memref<1x8xf32, #tpu.memory_space<vmem>>, vector<1x8xf32>
    %c0_25 = arith.constant 0 : index
    %c0_26 = arith.constant 0 : index
    %13 = vector.load %arg14[%c0_25, %c0_26] : memref<8x128xf32, #tpu.memory_space<vmem>>, vector<8x128xf32>
    %c0_27 = arith.constant 0 : index
    %c0_28 = arith.constant 0 : index
    %14 = vector.load %arg15[%c0_27, %c0_28] : memref<128x8xf32, #tpu.memory_space<vmem>>, vector<128x8xf32>
    %cst = arith.constant dense<0.000000e+00> : vector<8x8xf32>
    %15 = tpu.matmul %13, %0, %cst {dimension_numbers = #tpu.dot_dimension_numbers<[1], [0], [0], [1], [0, 0, 1, 1], [], []>} : vector<8x128xf32>, vector<128x8xf32>, vector<8x8xf32> -> vector<8x8xf32>
    %cst_29 = arith.constant 6.250000e-02 : f32
    %16 = vector.broadcast %cst_29 : f32 to vector<8x8xf32>
    %17 = arith.mulf %15, %16 : vector<8x8xf32>
    %18 = vector.broadcast %2 : vector<1x8xf32> to vector<8x8xf32>
    %19 = arith.addf %17, %18 : vector<8x8xf32>
    %20 = arith.addf %0, %1 : vector<128x8xf32>
    %cst_30 = arith.constant dense<0.000000e+00> : vector<128x8xf32>
    %21 = tpu.matmul %20, %4, %cst_30 {dimension_numbers = #tpu.dot_dimension_numbers<[1], [0], [0], [1], [0, 0, 1, 1], [], []>} : vector<128x8xf32>, vector<8x8xf32>, vector<128x8xf32> -> vector<128x8xf32>
    %22 = vector.broadcast %7 : vector<1x8xf32> to vector<128x8xf32>
    %23 = arith.addf %21, %22 : vector<128x8xf32>
    %cst_31 = arith.constant dense<0.000000e+00> : vector<128x8xf32>
    %24 = tpu.matmul %20, %5, %cst_31 {dimension_numbers = #tpu.dot_dimension_numbers<[1], [0], [0], [1], [0, 0, 1, 1], [], []>} : vector<128x8xf32>, vector<8x8xf32>, vector<128x8xf32> -> vector<128x8xf32>
    %25 = vector.broadcast %8 : vector<1x8xf32> to vector<128x8xf32>
    %26 = arith.addf %24, %25 : vector<128x8xf32>
    %cst_32 = arith.constant dense<0.000000e+00> : vector<8x8xf32>
    %27 = tpu.matmul %19, %3, %cst_32 {dimension_numbers = #tpu.dot_dimension_numbers<[1], [0], [0], [1], [0, 0, 1, 1], [], []>} : vector<8x8xf32>, vector<8x8xf32>, vector<8x8xf32> -> vector<8x8xf32>
    %28 = vector.broadcast %6 : vector<1x8xf32> to vector<8x8xf32>
    %29 = arith.addf %27, %28 : vector<8x8xf32>
    %cst_33 = arith.constant dense<0.000000e+00> : vector<8x8xf32>
    %30 = tpu.matmul %19, %4, %cst_33 {dimension_numbers = #tpu.dot_dimension_numbers<[1], [0], [0], [1], [0, 0, 1, 1], [], []>} : vector<8x8xf32>, vector<8x8xf32>, vector<8x8xf32> -> vector<8x8xf32>
    %31 = vector.broadcast %7 : vector<1x8xf32> to vector<8x8xf32>
    %32 = arith.addf %30, %31 : vector<8x8xf32>
    %cst_34 = arith.constant dense<0.000000e+00> : vector<8x8xf32>
    %33 = tpu.matmul %19, %5, %cst_34 {dimension_numbers = #tpu.dot_dimension_numbers<[1], [0], [0], [1], [0, 0, 1, 1], [], []>} : vector<8x8xf32>, vector<8x8xf32>, vector<8x8xf32> -> vector<8x8xf32>
    %34 = vector.broadcast %8 : vector<1x8xf32> to vector<8x8xf32>
    %35 = arith.addf %33, %34 : vector<8x8xf32>
    %cst_35 = arith.constant 5.000000e-01 : f32
    %36 = vector.broadcast %cst_35 : f32 to vector<8x8xf32>
    %37 = arith.mulf %29, %36 : vector<8x8xf32>
    %cst_36 = arith.constant dense<0.000000e+00> : vector<128x8xf32>
    %38 = tpu.matmul %14, %37, %cst_36 {dimension_numbers = #tpu.dot_dimension_numbers<[1], [0], [0], [1], [0, 0, 1, 1], [], []>} : vector<128x8xf32>, vector<8x8xf32>, vector<128x8xf32> -> vector<128x8xf32>
    %39 = arith.mulf %38, %23 : vector<128x8xf32>
    %cst_37 = arith.constant dense<0.000000e+00> : vector<128x2xf32>
    %40 = tpu.matmul %39, %9, %cst_37 {dimension_numbers = #tpu.dot_dimension_numbers<[1], [0], [0], [1], [0, 0, 1, 1], [], []>} : vector<128x8xf32>, vector<8x2xf32>, vector<128x2xf32> -> vector<128x2xf32>
    %41 = arith.mulf %37, %32 : vector<8x8xf32>
    %cst_38 = arith.constant dense<0.000000e+00> : vector<8x2xf32>
    %42 = tpu.matmul %41, %9, %cst_38 {dimension_numbers = #tpu.dot_dimension_numbers<[1], [0], [0], [1], [0, 0, 1, 1], [], []>} : vector<8x8xf32>, vector<8x2xf32>, vector<8x2xf32> -> vector<8x2xf32>
    %43 = vector.shape_cast %40 : vector<128x2xf32> to vector<8x16x2xf32>
    %cst_39 = arith.constant dense<0xFF800000> : vector<8x2xf32>
    %44 = vector.multi_reduction <maximumf>, %43, %cst_39 [1] : vector<8x16x2xf32> to vector<8x2xf32>
    %45 = arith.maximumf %44, %42 : vector<8x2xf32>
    %cst_40 = arith.constant dense<0.000000e+00> : vector<128x2xf32>
    %46 = tpu.matmul %14, %45, %cst_40 {dimension_numbers = #tpu.dot_dimension_numbers<[1], [0], [0], [1], [0, 0, 1, 1], [], []>} : vector<128x8xf32>, vector<8x2xf32>, vector<128x2xf32> -> vector<128x2xf32>
    %47 = arith.subf %40, %46 : vector<128x2xf32>
    %48 = math.exp %47 : vector<128x2xf32>
    %49 = arith.subf %42, %45 : vector<8x2xf32>
    %50 = math.exp %49 : vector<8x2xf32>
    %cst_41 = arith.constant dense<0.000000e+00> : vector<8x2xf32>
    %51 = tpu.matmul %13, %48, %cst_41 {dimension_numbers = #tpu.dot_dimension_numbers<[1], [0], [0], [1], [0, 0, 1, 1], [], []>} : vector<8x128xf32>, vector<128x2xf32>, vector<8x2xf32> -> vector<8x2xf32>
    %52 = arith.addf %51, %50 : vector<8x2xf32>
    %cst_42 = arith.constant 1.000000e+00 : f32
    %53 = vector.broadcast %cst_42 : f32 to vector<8x2xf32>
    %54 = arith.divf %53, %52 : vector<8x2xf32>
    %cst_43 = arith.constant dense<0.000000e+00> : vector<128x8xf32>
    %55 = tpu.matmul %48, %10, %cst_43 {dimension_numbers = #tpu.dot_dimension_numbers<[1], [0], [0], [1], [0, 0, 1, 1], [], []>} : vector<128x2xf32>, vector<2x8xf32>, vector<128x8xf32> -> vector<128x8xf32>
    %cst_44 = arith.constant dense<0.000000e+00> : vector<8x8xf32>
    %56 = tpu.matmul %50, %10, %cst_44 {dimension_numbers = #tpu.dot_dimension_numbers<[1], [0], [0], [1], [0, 0, 1, 1], [], []>} : vector<8x2xf32>, vector<2x8xf32>, vector<8x8xf32> -> vector<8x8xf32>
    %57 = arith.mulf %55, %26 : vector<128x8xf32>
    %cst_45 = arith.constant dense<0.000000e+00> : vector<8x8xf32>
    %58 = tpu.matmul %13, %57, %cst_45 {dimension_numbers = #tpu.dot_dimension_numbers<[1], [0], [0], [1], [0, 0, 1, 1], [], []>} : vector<8x128xf32>, vector<128x8xf32>, vector<8x8xf32> -> vector<8x8xf32>
    %59 = arith.mulf %56, %35 : vector<8x8xf32>
    %60 = arith.addf %58, %59 : vector<8x8xf32>
    %cst_46 = arith.constant dense<0.000000e+00> : vector<8x8xf32>
    %61 = tpu.matmul %54, %10, %cst_46 {dimension_numbers = #tpu.dot_dimension_numbers<[1], [0], [0], [1], [0, 0, 1, 1], [], []>} : vector<8x2xf32>, vector<2x8xf32>, vector<8x8xf32> -> vector<8x8xf32>
    %62 = arith.mulf %60, %61 : vector<8x8xf32>
    %cst_47 = arith.constant dense<0.000000e+00> : vector<8x8xf32>
    %63 = tpu.matmul %62, %11, %cst_47 {dimension_numbers = #tpu.dot_dimension_numbers<[1], [0], [0], [1], [0, 0, 1, 1], [], []>} : vector<8x8xf32>, vector<8x8xf32>, vector<8x8xf32> -> vector<8x8xf32>
    %64 = vector.broadcast %12 : vector<1x8xf32> to vector<8x8xf32>
    %65 = arith.addf %63, %64 : vector<8x8xf32>
    %c0_48 = arith.constant 0 : index
    %c0_49 = arith.constant 0 : index
    %66 = vector.load %arg16[%c0_48, %c0_49] : memref<8x8xf32, #tpu.memory_space<vmem>>, vector<8x8xf32>
    tpu.vector_store %arg16[%c0_48, %c0_49], %65 {strides = array<i32>} : memref<8x8xf32, #tpu.memory_space<vmem>>, vector<8x8xf32>,
    return
  }
  func.func @transform_0(%arg0: i32) -> (i32, i32) {
    %c0_i32 = arith.constant 0 : i32
    %c0_i32_0 = arith.constant 0 : i32
    return %arg0, %c0_i32 : i32, i32
  }
  func.func @transform_1(%arg0: i32) -> (i32, i32) {
    %c0_i32 = arith.constant 0 : i32
    %c0_i32_0 = arith.constant 0 : i32
    %c0_i32_1 = arith.constant 0 : i32
    return %c0_i32, %c0_i32_0 : i32, i32
  }
  func.func @transform_2(%arg0: i32) -> (i32, i32) {
    %c0_i32 = arith.constant 0 : i32
    %c0_i32_0 = arith.constant 0 : i32
    %c0_i32_1 = arith.constant 0 : i32
    return %c0_i32, %c0_i32_0 : i32, i32
  }
  func.func @transform_3(%arg0: i32) -> (i32, i32) {
    %c0_i32 = arith.constant 0 : i32
    %c0_i32_0 = arith.constant 0 : i32
    %c0_i32_1 = arith.constant 0 : i32
    return %c0_i32, %c0_i32_0 : i32, i32
  }
  func.func @transform_4(%arg0: i32) -> (i32, i32) {
    %c0_i32 = arith.constant 0 : i32
    %c0_i32_0 = arith.constant 0 : i32
    %c0_i32_1 = arith.constant 0 : i32
    return %c0_i32, %c0_i32_0 : i32, i32
  }
  func.func @transform_5(%arg0: i32) -> (i32, i32) {
    %c0_i32 = arith.constant 0 : i32
    %c0_i32_0 = arith.constant 0 : i32
    %c0_i32_1 = arith.constant 0 : i32
    return %c0_i32, %c0_i32_0 : i32, i32
  }
  func.func @transform_6(%arg0: i32) -> (i32, i32) {
    %c0_i32 = arith.constant 0 : i32
    %c0_i32_0 = arith.constant 0 : i32
    %c0_i32_1 = arith.constant 0 : i32
    return %c0_i32, %c0_i32_0 : i32, i32
  }
  func.func @transform_7(%arg0: i32) -> (i32, i32) {
    %c0_i32 = arith.constant 0 : i32
    %c0_i32_0 = arith.constant 0 : i32
    %c0_i32_1 = arith.constant 0 : i32
    return %c0_i32, %c0_i32_0 : i32, i32
  }
  func.func @transform_8(%arg0: i32) -> (i32, i32) {
    %c0_i32 = arith.constant 0 : i32
    %c0_i32_0 = arith.constant 0 : i32
    %c0_i32_1 = arith.constant 0 : i32
    return %c0_i32, %c0_i32_0 : i32, i32
  }
  func.func @transform_9(%arg0: i32) -> (i32, i32) {
    %c0_i32 = arith.constant 0 : i32
    %c0_i32_0 = arith.constant 0 : i32
    %c0_i32_1 = arith.constant 0 : i32
    return %c0_i32, %c0_i32_0 : i32, i32
  }
  func.func @transform_10(%arg0: i32) -> (i32, i32) {
    %c0_i32 = arith.constant 0 : i32
    %c0_i32_0 = arith.constant 0 : i32
    %c0_i32_1 = arith.constant 0 : i32
    return %c0_i32, %c0_i32_0 : i32, i32
  }
  func.func @transform_11(%arg0: i32) -> (i32, i32) {
    %c0_i32 = arith.constant 0 : i32
    %c0_i32_0 = arith.constant 0 : i32
    %c0_i32_1 = arith.constant 0 : i32
    return %c0_i32, %c0_i32_0 : i32, i32
  }
  func.func @transform_12(%arg0: i32) -> (i32, i32) {
    %c0_i32 = arith.constant 0 : i32
    %c0_i32_0 = arith.constant 0 : i32
    %c0_i32_1 = arith.constant 0 : i32
    return %c0_i32, %c0_i32_0 : i32, i32
  }
  func.func @transform_13(%arg0: i32) -> (i32, i32) {
    %c0_i32 = arith.constant 0 : i32
    %c0_i32_0 = arith.constant 0 : i32
    %c0_i32_1 = arith.constant 0 : i32
    return %c0_i32, %c0_i32_0 : i32, i32
  }
  func.func @transform_14(%arg0: i32) -> (i32, i32) {
    %c0_i32 = arith.constant 0 : i32
    %c0_i32_0 = arith.constant 0 : i32
    %c0_i32_1 = arith.constant 0 : i32
    return %c0_i32, %c0_i32_0 : i32, i32
  }
  func.func @transform_15(%arg0: i32) -> (i32, i32) {
    %c0_i32 = arith.constant 0 : i32
    %c0_i32_0 = arith.constant 0 : i32
    return %arg0, %c0_i32 : i32, i32
  }
}

</mosaic_0001>

<bundles_post_ra>
// kernel: tpu_custom_call.1
= control target key start
LH: loop header
LB: loop body
LE: loop exit
PB: predicated region body
PF: predicated region fallthrough
CT: control target
= control target key end

     0   :  { %s3452_s18 = smov 0   ;;  %s4156_s0 = inlined_call_operand.vmem [shape: f32[256,8], index: 0, kind: input, shape index: {}]   ;;  %s4157_s1 = inlined_call_operand.vmem [shape: f32[128,8], index: 1, kind: input, shape index: {}]   ;;  %s4158_s2 = inlined_call_operand.vmem [shape: f32[1,8], index: 2, kind: input, shape index: {}]   ;;  %s4159_s3 = inlined_call_operand.vmem [shape: f32[8,8], index: 3, kind: input, shape index: {}]   ;;  %s4160_s4 = inlined_call_operand.vmem [shape: f32[8,8], index: 4, kind: input, shape index: {}]   ;;  %s4161_s5 = inlined_call_operand.vmem [shape: f32[8,8], index: 5, kind: input, shape index: {}]   ;;  %s4162_s6 = inlined_call_operand.vmem [shape: f32[1,8], index: 6, kind: input, shape index: {}]   ;;  %s4163_s7 = inlined_call_operand.vmem [shape: f32[1,8], index: 7, kind: input, shape index: {}]   ;;  %s4164_s8 = inlined_call_operand.vmem [shape: f32[1,8], index: 8, kind: input, shape index: {}]   ;;  %s4165_s9 = inlined_call_operand.vmem [shape: f32[8,2], index: 9, kind: input, shape index: {}]   ;;  %s4166_s10 = inlined_call_operand.vmem [shape: f32[2,8], index: 10, kind: input, shape index: {}]   ;;  %s4167_s11 = inlined_call_operand.vmem [shape: f32[8,8], index: 11, kind: input, shape index: {}]   ;;  %s4168_s12 = inlined_call_operand.vmem [shape: f32[1,8], index: 12, kind: input, shape index: {}]   ;;  %s4169_s13 = inlined_call_operand.vmem [shape: f32[8,128], index: 13, kind: input, shape index: {}]   ;;  %s4170_s14 = inlined_call_operand.vmem [shape: f32[128,8], index: 14, kind: input, shape index: {}]   ;;  %s4171_s15 = inlined_call_operand.vmem [shape: f32[16,8], index: 15, kind: output, shape index: {}]  }
   0x1 LB: > { %s3458_s19 = sadd.s32 4294967295, %s3367_s18   ;;  %p2659_p0 = scmp.ge.s32.totalorder %s3367_s18, 1  ;;  %s3367_s18 = sphi %s3452_s18, %s25_s18  }
   0x2   : > { %p438_p1 = scmp.lt.s32.totalorder %s3367_s18, 3 }
   0x4   : > { %p439_p2 = pnand %p2659_p0, %p438_p1 }
   0x6   : > { %442 = sbr.rel (%p439_p2) target bundleno = 1910 (0x776), region = 80 }
   0xd   : > { %s2660_s20 = sshll.u32 %s3458_s19, 4  ;;  %v4172_v0 = vmov 0.0|0.0   ;;  %vm3370_vm0 = vmmov 0   ;;  %v4174_v1 = vmov 0.0   ;;  %v3469_v2 = vld [vmem:[%s4160_s4] sm:$0xff]  ;;  %v512_v28 = vld [vmem:[%s4157_s1 + $0x8] sm:$0xff] }
   0xe   : > { %3239 = vmatprep.subr.bf16.mxu0 %v4172_v0  ;;  %p486_p3 = scmp.lt.s32.totalorder %s2660_s20, 31  ;;  %2975 = vmatprep.mubr.msk.f32.mxu0 %vm3370_vm0, %v4174_v1  ;;  %v511_v27 = vld [vmem:[%s4157_s1] sm:$0xff]  ;;  %vm655_vm1 = vcmask 64512   ;;  %v514_v41 = vld [vmem:[%s4157_s1 + $0x18] sm:$0xff]  ;;  %v513_v44 = vld [vmem:[%s4157_s1 + $0x10] sm:$0xff]  ;;  %vm1696_vm2 = vcmask 15360  }
   0xf   : > { %3311 = vmatprep.subr.mxu1 %v3469_v2  ;;  %v3554_v30 = vld [vmem:[%s4169_s13] sm:$0xff]  ;;  %v516_v45 = vld [vmem:[%s4157_s1 + $0x28] sm:$0xff]  ;;  %v517_v49 = vld [vmem:[%s4157_s1 + $0x30] sm:$0xff]  ;;  %vm1802_vm3 = vcmask 1041409   ;;  %vm1805_vm4 = vcmask 1042434   ;;  %vm1808_vm5 = vcmask 1043459  }
  0x10   : > { %s4209_s20 = smov (!%p486_p3, %s2660_s20), 31  ;;  %3312 = vmatpush3.msra.mxu1 %v3469_v2  ;;  %v528_v32 = vld [vmem:[%s4159_s3] sm:$0xff]  ;;  %v518_v51 = vld [vmem:[%s4157_s1 + $0x38] sm:$0xff]  ;;  %v520_v55 = vld [vmem:[%s4157_s1 + $0x48] sm:$0xff]  ;;  %vm1811_vm6 = vcmask 1044484   ;;  %vm1814_vm7 = vcmask 1045509  }
  0x11   : > { %s2661_s21 = sshll.u32 %s4209_s20, 3  ;;  %v530_v33 = vld [vmem:[%s4161_s5] sm:$0xff]  ;;  %v521_v57 = vld [vmem:[%s4157_s1 + $0x50] sm:$0xff]  ;;  %v522_v59 = vld [vmem:[%s4157_s1 + $0x58] sm:$0xff]  ;;  %vm1817_vm8 = vcmask 1046534   ;;  %vm1820_vm9 = vcmask 1047559  }
  0x12   : > { %s3474_s26 = scalar_lea.vmem %s4156_s0, %s2661_s21  ;;  %3004 = vmatprep.subr.mxu1 %v530_v33  ;;  %v2663_v34 = vld [vmem:[%s4158_s2] ss:$0 sm:$0xff]  ;;  %v524_v63 = vld [vmem:[%s4157_s1 + $0x68] sm:$0xff]  ;;  %vm2139_vm10 = vcmask 1041408   ;;  %p491_p4 = scmp.lt.s32.totalorder %s3458_s19, 1 }
  0x13   : > { %v495_v3 = vld [vmem:[%s3474_s26] sm:$0xff]  ;;  %v496_v4 = vld [vmem:[%s3474_s26 + $0x8] sm:$0xff]  ;;  %v3480_v5 = vld [vmem:[%s3474_s26 + $0x10] sm:$0xff] }
  0x14   : > { %v3240_v6 = vpack.c.bf16 %v496_v4, %v495_v3  ;;  %v3484_v7 = vld [vmem:[%s3474_s26 + $0x18] sm:$0xff]  ;;  %v3490_v9 = vld [vmem:[%s3474_s26 + $0x20] sm:$0xff]  ;;  %v3493_v10 = vld [vmem:[%s3474_s26 + $0x28] sm:$0xff]  ;;  %v3549_v29 = vadd.f32 %v511_v27, %v495_v3  ;;  %v3557_v31 = vadd.f32 %v512_v28, %v496_v4  ;;  %v635_v48 = vadd.f32 %v513_v44, %v3480_v5  ;;  %s4211_s19 = smov (!%p491_p4, %s3458_s19), 1 }
  0x15   : > { %v3243_v8 = vpack.c.bf16 %v3484_v7, %v3480_v5  ;;  %v3246_v11 = vpack.c.bf16 %v3493_v10, %v3490_v9  ;;  %v3499_v12 = vld [vmem:[%s3474_s26 + $0x30] sm:$0xff]  ;;  %v3502_v13 = vld [vmem:[%s3474_s26 + $0x38] sm:$0xff]  ;;  %v3508_v15 = vld [vmem:[%s3474_s26 + $0x40] sm:$0xff]  ;;  %v636_v43 = vadd.f32 %v514_v41, %v3484_v7  ;;  %v638_v50 = vadd.f32 %v516_v45, %v3493_v10  ;;  %s2662_s22 = sshll.u32 %s4211_s19, 3 }
  0x16   : > { %3241 = vmatpush3.bf16.msra.mxu0 %v3240_v6  ;;  %v3249_v14 = vpack.c.bf16 %v3502_v13, %v3499_v12  ;;  %v3511_v16 = vld [vmem:[%s3474_s26 + $0x48] sm:$0xff]  ;;  %v3517_v18 = vld [vmem:[%s3474_s26 + $0x50] sm:$0xff]  ;;  %v3520_v19 = vld [vmem:[%s3474_s26 + $0x58] sm:$0xff]  ;;  %2983 = vmatprep.mubr.msk.f32.mxu1 %vm655_vm1, %v635_v48  ;;  %v639_v52 = vadd.f32 %v517_v49, %v3499_v12  ;;  %v640_v54 = vadd.f32 %v518_v51, %v3502_v13  ;;  %s494_s27 = scalar_lea.vmem %s4171_s15, %s2662_s22 }
  0x17   : > { %3242 = vmatprep.subr.bf16.mxu0 %v4172_v0  ;;  %v3252_v17 = vpack.c.bf16 %v3511_v16, %v3508_v15  ;;  %v3255_v20 = vpack.c.bf16 %v3520_v19, %v3517_v18  ;;  %v3526_v21 = vld [vmem:[%s3474_s26 + $0x60] sm:$0xff]  ;;  %v3529_v22 = vld [vmem:[%s3474_s26 + $0x68] sm:$0xff]  ;;  %v3535_v24 = vld [vmem:[%s3474_s26 + $0x70] sm:$0xff]  ;;  %2984 = vmatmul.mubr.msk.f32.vlgmr.msra.gmra.mrb[0].mxu1 %vm655_vm1, %v636_v43  ;;  %v642_v58 = vadd.f32 %v520_v55, %v3511_v16 }
  0x18   : > { %v3258_v23 = vpack.c.bf16 %v3529_v22, %v3526_v21  ;;  %v3538_v25 = vld [vmem:[%s3474_s26 + $0x78] sm:$0xff]  ;;  %v515_v42 = vld [vmem:[%s4157_s1 + $0x20] sm:$0xff]  ;;  %3005 = vmatpush3.msra.mxu1 %v530_v33  ;;  %v643_v60 = vadd.f32 %v521_v57, %v3517_v18  ;;  %v644_v62 = vadd.f32 %v522_v59, %v3520_v19  ;;  %v525_v3 = vld [vmem:[%s4157_s1 + $0x70] sm:$0xff]  ;;  %v646_v4 = vadd.f32 %v524_v63, %v3529_v22 }
  0x19   : > { %v3261_v26 = vpack.c.bf16 %v3538_v25, %v3535_v24  ;;  %v637_v46 = vadd.f32 %v515_v42, %v3490_v9  ;;  %v3608_v47 = vld [vmem:[%s4170_s14] sm:$0xff]  ;;  %v526_v5 = vld [vmem:[%s4157_s1 + $0x78] sm:$0xff]  ;;  %v647_v6 = vadd.f32 %v525_v3, %v3535_v24  ;;  %v3701_v16 = vld [vmem:[%s4170_s14 + $0x8] sm:$0xff] }
  0x1a   : > { %3244 = vmatpush3.bf16.msra.mxu0 %v3243_v8  ;;  %v519_v53 = vld [vmem:[%s4157_s1 + $0x40] sm:$0xff]  ;;  %v648_v7 = vadd.f32 %v526_v5, %v3538_v25  ;;  %v3707_v19 = vld [vmem:[%s4170_s14 + $0x10] sm:$0xff]  ;;  %v3719_v22 = vld [vmem:[%s4170_s14 + $0x18] sm:$0xff] }
  0x1b   : > { %3245 = vmatprep.subr.bf16.mxu0 %v4172_v0  ;;  %2986 = vmatprep.mubr.msk.f32.mxu1 %vm655_vm1, %v637_v46  ;;  %v641_v56 = vadd.f32 %v519_v53, %v3508_v15  ;;  %v523_v61 = vld [vmem:[%s4157_s1 + $0x60] sm:$0xff]  ;;  %v3733_v25 = vld [vmem:[%s4170_s14 + $0x28] sm:$0xff]  ;;  %v3747_v27 = vld [vmem:[%s4170_s14 + $0x38] sm:$0xff] }
  0x1c   : > { %2987 = vmatmul.mubr.msk.f32.gmra.mrb[2].mxu1 %vm655_vm1, %v638_v50  ;;  %v534_v8 = vld [vmem:[%s4165_s9] sm:$0xff] }
  0x1d   : > { %2989 = vmatprep.mubr.msk.f32.mxu1 %vm655_vm1, %v639_v52  ;;  %3071 = vmatprep.subr.mxu1 %v534_v8  ;;  %v2698_v9 = vld [vmem:[%s4162_s6] ss:$0 sm:$0xff] }
  0x1e   : > { %3247 = vmatpush3.bf16.msra.mxu0 %v3246_v11  ;;  %v3724_v24 = vld [vmem:[%s4170_s14 + $0x20] sm:$0xff] }
  0x1f   : > { %3248 = vmatprep.subr.bf16.mxu0 %v4172_v0  ;;  %v3752_v28 = vld [vmem:[%s4170_s14 + $0x40] sm:$0xff] }
  0x20   : > { %2990 = vmatmul.mubr.msk.f32.gmra.mrb[4].mxu1 %vm655_vm1, %v640_v54 }
  0x21   : > { %2992 = vmatprep.mubr.msk.f32.mxu1 %vm655_vm1, %v641_v56 }
  0x22   : > { %3250 = vmatpush3.bf16.msra.mxu0 %v3249_v14  ;;  %v3696_v14 = vld [vmem:[%s4163_s7] ss:$0 sm:$0xff] }
  0x23   : > { %3251 = vmatprep.subr.bf16.mxu0 %v4172_v0 }
  0x24   : > { %2993 = vmatmul.mubr.msk.f32.gmra.mrb[6].mxu1 %vm655_vm1, %v642_v58 }
  0x25   : > { %2995 = vmatprep.mubr.msk.f32.mxu1 %vm655_vm1, %v643_v60 }
  0x26   : > { %3253 = vmatpush3.bf16.msra.mxu0 %v3252_v17 }
  0x27   : > { %3254 = vmatprep.subr.bf16.mxu0 %v4172_v0 }
  0x28   : > { %2996 = vmatmul.mubr.msk.f32.gmra.mrb[8].mxu1 %vm655_vm1, %v644_v62 }
  0x2a   : > { %3256 = vmatpush3.bf16.msra.mxu0 %v3255_v20 }
  0x2b   : > { %3257 = vmatprep.subr.bf16.mxu0 %v4172_v0 }
  0x2e   : > { %3259 = vmatpush3.bf16.msra.mxu0 %v3258_v23 }
  0x2f   : > { %3260 = vmatprep.subr.bf16.mxu0 %v4172_v0 }
  0x32   : > { %3262 = vmatpush3.bf16.msra.mxu0 %v3261_v26  ;;  %v3738_v26 = vld [vmem:[%s4170_s14 + $0x30] sm:$0xff] }
  0x33   : > { %2978 = vmatprep.subr.mxu0 %v3469_v2 }
  0x35   : > { %2976 = vmatmul.mubr.f32.vlgmr.msra.gmra.mrb[0].mxu0 %v3554_v30 }
  0x36   : > { %2979 = vmatpush3.msra.mxu0 %v3469_v2  ;;  %2980 = vmatprep.mubr.msk.f32.mxu0 %vm655_vm1, %v3549_v29 }
  0x37   : > { %3030 = vmatprep.subr.mxu0 %v4174_v1 }
  0x39   : > { %2981 = vmatmul.mubr.msk.f32.vlgmr.msra.gmra.mrb[2].mxu0 %vm655_vm1, %v3557_v31 }
  0x3a   : > { %3032 = vmatprep.mubr.msk.f32.mxu0 %vm3370_vm0, %v4174_v1  ;;  %3031 = vmatpush3.msra.mxu0 %v528_v32  ;;  %v3775_v32 = vld [vmem:[%s4170_s14 + $0x58] sm:$0xff] }
  0x3b   : > { %3035 = vmatprep.subr.mxu0 %v4174_v1 }
 0x108   : > { %v621_v35 = vpop.f32.mrb[0].mxu0 }
 0x109   : > { %v625_v36 = vmul.f32 0.0625, %v621_v35  ;;  %v2977_v37 = vpop.f32.mrb[1].mxu0  ;;  %v3794_v35 = vld [vmem:[%s4170_s14 + $0x70] sm:$0xff] }
 0x10a   : > { %v2985_v37 = vpop.f32.mrb[0].mxu1 }
 0x10b   : > { %v632_v38 = vadd.f32 %v2663_v34, %v625_v36  ;;  %v3789_v34 = vld [vmem:[%s4170_s14 + $0x68] sm:$0xff]  ;;  %v3803_v36 = vld [vmem:[%s4170_s14 + $0x78] sm:$0xff] }
 0x10c   : > { %v3578_v39 = vpop.f32.mrb[2].mxu0 }
 0x10d   : > { %3033 = vmatmul.mubr.msk.f32.vlgmr.msra.gmra.mrb[4].mxu0 %vm655_vm1, %v632_v38  ;;  %v3581_v40 = vpop.f32.mrb[3].mxu0 }
 0x10e   : > { %3036 = vmatpush3.msra.mxu0 %v3469_v2  ;;  %3037 = vmatprep.mubr.msk.f32.mxu0 %vm3370_vm0, %v4174_v1  ;;  %v645_v2 = vadd.f32 %v523_v61, %v3526_v21 }
 0x10f   : > { %3040 = vmatprep.subr.mxu0 %v4174_v1 }
 0x110   : > { %2998 = vmatprep.mubr.msk.f32.mxu1 %vm655_vm1, %v645_v2 }
 0x111   : > { %3038 = vmatmul.mubr.msk.f32.vlgmr.msra.gmra.mrb[6].mxu0 %vm655_vm1, %v632_v38  ;;  %2999 = vmatmul.mubr.msk.f32.gmra.mrb[10].mxu1 %vm655_vm1, %v646_v4 }
 0x112   : > { %3041 = vmatpush3.msra.mxu0 %v530_v33  ;;  %3042 = vmatprep.mubr.msk.f32.mxu0 %vm3370_vm0, %v4174_v1  ;;  %v3780_v33 = vld [vmem:[%s4170_s14 + $0x60] sm:$0xff] }
 0x113   : > { %3001 = vmatprep.mubr.msk.f32.mxu1 %vm655_vm1, %v647_v6 }
 0x115   : > { %3043 = vmatmul.mubr.msk.f32.vlgmr.msra.gmra.mrb[8].mxu0 %vm655_vm1, %v632_v38  ;;  %3002 = vmatmul.mubr.msk.f32.gmra.mrb[12].mxu1 %vm655_vm1, %v648_v7  ;;  %v780_v38 = vpop.f32.mrb[1].mxu1 }
 0x116   : > { %3047 = vmatprep.mubr.msk.f32.mxu0 %vm655_vm1, %v3608_v47  ;;  %3006 = vmatprep.mubr.msk.f32.mxu1 %vm655_vm1, %v3549_v29  ;;  %v3761_v29 = vld [vmem:[%s4170_s14 + $0x48] sm:$0xff]  ;;  %v2988_v41 = vpop.f32.mrb[2].mxu1 }
 0x117   : > { %v790_v42 = vpop.f32.mrb[3].mxu1 }
 0x119   : > { %3007 = vmatmul.mubr.msk.f32.vlgmr.msra.gmra.mrb[14].mxu1 %vm655_vm1, %v3557_v31  ;;  %v3766_v31 = vld [vmem:[%s4170_s14 + $0x50] sm:$0xff] }
 0x11a   : > { %3009 = vmatprep.mubr.msk.f32.mxu1 %vm655_vm1, %v635_v48  ;;  %3072 = vmatpush3.msra.mxu1 %v534_v8 }
 0x11b   : > { %3263 = vmatprep.subr.bf16.mxu1 %v4172_v0 }
 0x11d   : > { %3010 = vmatmul.mubr.msk.f32.gmra.mrb[16].mxu1 %vm655_vm1, %v636_v43  ;;  %v2991_v43 = vpop.f32.mrb[4].mxu1 }
 0x11e   : > { %3012 = vmatprep.mubr.msk.f32.mxu1 %vm655_vm1, %v637_v46  ;;  %v800_v44 = vpop.f32.mrb[5].mxu1 }
 0x11f   : > { %v2994_v45 = vpop.f32.mrb[6].mxu1 }
 0x120   : > { %v810_v46 = vpop.f32.mrb[7].mxu1 }
 0x121   : > { %3013 = vmatmul.mubr.msk.f32.gmra.mrb[18].mxu1 %vm655_vm1, %v638_v50  ;;  %v2997_v48 = vpop.f32.mrb[8].mxu1 }
 0x122   : > { %3015 = vmatprep.mubr.msk.f32.mxu1 %vm655_vm1, %v639_v52  ;;  %v820_v49 = vpop.f32.mrb[9].mxu1 }
 0x125   : > { %3016 = vmatmul.mubr.msk.f32.gmra.mrb[20].mxu1 %vm655_vm1, %v640_v54 }
 0x126   : > { %3018 = vmatprep.mubr.msk.f32.mxu1 %vm655_vm1, %v641_v56 }
 0x129   : > { %3019 = vmatmul.mubr.msk.f32.gmra.mrb[22].mxu1 %vm655_vm1, %v642_v58 }
 0x12a   : > { %3021 = vmatprep.mubr.msk.f32.mxu1 %vm655_vm1, %v643_v60 }
 0x12d   : > { %3022 = vmatmul.mubr.msk.f32.gmra.mrb[24].mxu1 %vm655_vm1, %v644_v62 }
 0x12e   : > { %3024 = vmatprep.mubr.msk.f32.mxu1 %vm655_vm1, %v645_v2 }
 0x131   : > { %3025 = vmatmul.mubr.msk.f32.gmra.mrb[26].mxu1 %vm655_vm1, %v646_v4 }
 0x132   : > { %3027 = vmatprep.mubr.msk.f32.mxu1 %vm655_vm1, %v647_v6 }
 0x135   : > { %3028 = vmatmul.mubr.msk.f32.gmra.mrb[28].mxu1 %vm655_vm1, %v648_v7  ;;  %v776_v7 = vadd.f32 %v3578_v39, %v3696_v14 }
 0x1e0   : > { %v1075_v10 = vpop.f32.mrb[4].mxu0 }
 0x1e1   : > { %v1076_v11 = vadd.f32 %v2698_v9, %v1075_v10  ;;  %v3034_v12 = vpop.f32.mrb[5].mxu0 }
 0x1e3   : > { %v1219_v13 = vmul.f32 0.5, %v1076_v11  ;;  %v786_v11 = vadd.f32 %v2985_v37, %v3696_v14 }
 0x1e4   : > { %v1145_v15 = vpop.f32.mrb[6].mxu0  ;;  %v3812_v50 = vpop.f32.mrb[10].mxu1 }
 0x1e5   : > { %v1146_v17 = vadd.f32 %v3696_v14, %v1145_v15  ;;  %v3039_v18 = vpop.f32.mrb[7].mxu0  ;;  %3045 = vmatprep.subr.mxu0 %v1219_v13  ;;  %v3814_v51 = vpop.f32.mrb[11].mxu1  ;;  %v781_v15 = vadd.f32 %v3696_v14, %v780_v38 }
 0x1e6   : > { %3046 = vmatpush3.msra.mxu0 %v1219_v13 }
 0x1e7   : > { %v1622_v20 = vmul.f32 %v1219_v13, %v1146_v17  ;;  %3048 = vmatmul.mubr.msk.f32.vlgmr.msra.gmra.mrb[10].mxu0 %vm655_vm1, %v3701_v16  ;;  %3097 = vmatprep.subr.mxu0 %v4174_v1 }
 0x1e8   : > { %v3712_v21 = vpop.f32.mrb[8].mxu0  ;;  %3050 = vmatprep.mubr.msk.f32.mxu0 %vm655_vm1, %v3707_v19  ;;  %3098 = vmatpush3.msra.mxu0 %v534_v8  ;;  %v3816_v52 = vpop.f32.mrb[12].mxu1  ;;  %v771_v8 = vadd.f32 %v3696_v14, %v3581_v40  ;;  %v791_v40 = vadd.f32 %v3696_v14, %v790_v42 }
 0x1e9   : > { %v3044_v23 = vpop.f32.mrb[9].mxu0  ;;  %v3818_v53 = vpop.f32.mrb[13].mxu1 }
 0x1eb   : > { %3051 = vmatmul.mubr.msk.f32.gmra.mrb[12].mxu0 %vm655_vm1, %v3719_v22 }
 0x1ec   : > { %3053 = vmatprep.mubr.msk.f32.mxu0 %vm655_vm1, %v3724_v24  ;;  %v3820_v54 = vpop.f32.mrb[14].mxu1 }
 0x1ef   : > { %3054 = vmatmul.mubr.msk.f32.gmra.mrb[14].mxu0 %vm655_vm1, %v3733_v25 }
 0x1f0   : > { %3056 = vmatprep.mubr.msk.f32.mxu0 %vm655_vm1, %v3738_v26 }
 0x1f3   : > { %3057 = vmatmul.mubr.msk.f32.gmra.mrb[16].mxu0 %vm655_vm1, %v3747_v27 }
 0x1f4   : > { %3059 = vmatprep.mubr.msk.f32.mxu0 %vm655_vm1, %v3752_v28 }
 0x1f7   : > { %3060 = vmatmul.mubr.msk.f32.gmra.mrb[18].mxu0 %vm655_vm1, %v3761_v29 }
 0x1f8   : > { %3062 = vmatprep.mubr.msk.f32.mxu0 %vm655_vm1, %v3766_v31 }
 0x1fb   : > { %3063 = vmatmul.mubr.msk.f32.gmra.mrb[20].mxu0 %vm655_vm1, %v3775_v32 }
 0x1fc   : > { %3065 = vmatprep.mubr.msk.f32.mxu0 %vm655_vm1, %v3780_v33 }
 0x1ff   : > { %3066 = vmatmul.mubr.msk.f32.gmra.mrb[22].mxu0 %vm655_vm1, %v3789_v34 }
 0x200   : > { %3068 = vmatprep.mubr.msk.f32.mxu0 %vm655_vm1, %v3794_v35 }
 0x203   : > { %3069 = vmatmul.mubr.msk.f32.gmra.mrb[24].mxu0 %vm655_vm1, %v3803_v36 }
 0x204   : > { %3099 = vmatprep.mubr.msk.f32.mxu0 %vm3370_vm0, %v4174_v1 }
 0x207   : > { %3100 = vmatmul.mubr.msk.f32.vlgmr.msra.gmra.mrb[26].mxu0 %vm655_vm1, %v1622_v20  ;;  %v796_v20 = vadd.f32 %v2988_v41, %v3696_v14 }
 0x208   : > { %3104 = vmatprep.mubr.msk.f32.mxu0 %vm655_vm1, %v3608_v47  ;;  %v3822_v47 = vpop.f32.mrb[15].mxu1 }
 0x209   : > { %4176 = vst [vmem:[#allocation2_spill] sm:$0xff] %v3822_v47  ;;  %v3824_v55 = vpop.f32.mrb[16].mxu1 }
 0x20a   : > { %4177 = vst [vmem:[#allocation3_spill] sm:$0xff] %v3824_v55  ;;  %v3826_v56 = vpop.f32.mrb[17].mxu1 }
 0x20b   : > { %4178 = vst [vmem:[#allocation4_spill] sm:$0xff] %v3826_v56  ;;  %v3828_v57 = vpop.f32.mrb[18].mxu1 }
 0x20c   : > { %4179 = vst [vmem:[#allocation5_spill] sm:$0xff] %v3828_v57  ;;  %v3830_v58 = vpop.f32.mrb[19].mxu1 }
 0x20d   : > { %4180 = vst [vmem:[#allocation6_spill] sm:$0xff] %v3830_v58  ;;  %v3832_v59 = vpop.f32.mrb[20].mxu1 }
 0x20e   : > { %4181 = vst [vmem:[#allocation7_spill] sm:$0xff] %v3832_v59  ;;  %v3834_v60 = vpop.f32.mrb[21].mxu1 }
 0x20f   : > { %4182 = vst [vmem:[#allocation8_spill] sm:$0xff] %v3834_v60  ;;  %v3836_v61 = vpop.f32.mrb[22].mxu1 }
 0x210   : > { %4183 = vst [vmem:[#allocation9_spill] sm:$0xff] %v3836_v61  ;;  %v3838_v62 = vpop.f32.mrb[23].mxu1 }
 0x211   : > { %4184 = vst [vmem:[#allocation10_spill] sm:$0xff] %v3838_v62  ;;  %v3840_v63 = vpop.f32.mrb[24].mxu1 }
 0x212   : > { %4185 = vst [vmem:[#allocation11_spill] sm:$0xff] %v3840_v63  ;;  %v3842_v2 = vpop.f32.mrb[25].mxu1 }
 0x213   : > { %4186 = vst [vmem:[#allocation12_spill] sm:$0xff] %v3842_v2  ;;  %v3844_v3 = vpop.f32.mrb[26].mxu1 }
 0x214   : > { %4187 = vst [vmem:[#allocation13_spill] sm:$0xff] %v3844_v3  ;;  %v3846_v4 = vpop.f32.mrb[27].mxu1 }
 0x215   : > { %4188 = vst [vmem:[#allocation14_spill] sm:$0xff] %v3846_v4  ;;  %v3848_v5 = vpop.f32.mrb[28].mxu1 }
 0x216   : > { %4189 = vst [vmem:[#allocation15_spill] sm:$0xff] %v3848_v5  ;;  %v3850_v6 = vpop.f32.mrb[29].mxu1 }
 0x217   : > { %4190 = vst [vmem:[#allocation16_spill] sm:$0xff] %v3850_v6 }
 0x2ba   : > { %v3049_v9 = vpop.f32.mrb[10].mxu0 }
 0x2bb   : > { %v1414_v10 = vmul.f32 %v3049_v9, %v776_v7  ;;  %v1334_v12 = vpop.f32.mrb[11].mxu0  ;;  %v806_v7 = vadd.f32 %v2991_v43, %v3696_v14  ;;  %v801_v9 = vadd.f32 %v3696_v14, %v800_v44 }
 0x2bc   : > { %v1413_v13 = vmul.f32 %v1334_v12, %v771_v8 }
 0x2be   : > { %v3052_v17 = vpop.f32.mrb[12].mxu0  ;;  %3073 = vmatprep.mubr.msk.f32.mxu1 %vm655_vm1, %v1413_v13 }
 0x2bf   : > { %v1416_v18 = vmul.f32 %v3052_v17, %v786_v11  ;;  %v1344_v23 = vpop.f32.mrb[13].mxu0  ;;  %3074 = vmatmul.mubr.msk.f32.vlgmr.msra.gmra.mrb[30].mxu1 %vm655_vm1, %v1414_v10  ;;  %v816_v10 = vadd.f32 %v2994_v45, %v3696_v14 }
 0x2c0   : > { %v1415_v39 = vmul.f32 %v1344_v23, %v781_v15  ;;  %v826_v15 = vadd.f32 %v2997_v48, %v3696_v14  ;;  %v836_v23 = vadd.f32 %v3812_v50, %v3696_v14  ;;  %v831_v48 = vadd.f32 %v3696_v14, %v3814_v51 }
 0x2c1   : > { %v841_v50 = vadd.f32 %v3696_v14, %v3818_v53 }
 0x2c2   : > { %v3055_v0 = vpop.f32.mrb[14].mxu0  ;;  %3076 = vmatprep.mubr.msk.f32.mxu1 %vm655_vm1, %v1415_v39 }
 0x2c3   : > { %v1418_v37 = vmul.f32 %v3055_v0, %v796_v20  ;;  %v1354_v8 = vpop.f32.mrb[15].mxu0  ;;  %3077 = vmatmul.mubr.msk.f32.gmra.mrb[32].mxu1 %vm655_vm1, %v1416_v18  ;;  %v811_v0 = vadd.f32 %v3696_v14, %v810_v46  ;;  %v821_v18 = vadd.f32 %v3696_v14, %v820_v49  ;;  %v846_v49 = vadd.f32 %v3816_v52, %v3696_v14 }
 0x2c4   : > { %v1417_v38 = vmul.f32 %v1354_v8, %v791_v40 }
 0x2c6   : > { %v3058_v11 = vpop.f32.mrb[16].mxu0  ;;  %3079 = vmatprep.mubr.msk.f32.mxu1 %vm655_vm1, %v1417_v38 }
 0x2c7   : > { %v1420_v41 = vmul.f32 %v3058_v11, %v806_v7  ;;  %v1364_v12 = vpop.f32.mrb[17].mxu0  ;;  %3080 = vmatmul.mubr.msk.f32.gmra.mrb[34].mxu1 %vm655_vm1, %v1418_v37 }
 0x2c8   : > { %v1419_v42 = vmul.f32 %v1364_v12, %v801_v9 }
 0x2ca   : > { %v3061_v13 = vpop.f32.mrb[18].mxu0  ;;  %3082 = vmatprep.mubr.msk.f32.mxu1 %vm655_vm1, %v1419_v42 }
 0x2cb   : > { %v1422_v43 = vmul.f32 %v3061_v13, %v816_v10  ;;  %v1374_v17 = vpop.f32.mrb[19].mxu0  ;;  %3083 = vmatmul.mubr.msk.f32.gmra.mrb[36].mxu1 %vm655_vm1, %v1420_v41 }
 0x2cc   : > { %v1421_v44 = vmul.f32 %v1374_v17, %v811_v0 }
 0x2ce   : > { %v3064_v20 = vpop.f32.mrb[20].mxu0  ;;  %3085 = vmatprep.mubr.msk.f32.mxu1 %vm655_vm1, %v1421_v44 }
 0x2cf   : > { %v1424_v45 = vmul.f32 %v3064_v20, %v826_v15  ;;  %v1384_v46 = vpop.f32.mrb[21].mxu0  ;;  %3086 = vmatmul.mubr.msk.f32.gmra.mrb[38].mxu1 %vm655_vm1, %v1422_v43 }
 0x2d0   : > { %v1423_v39 = vmul.f32 %v1384_v46, %v821_v18 }
 0x2d2   : > { %v3067_v40 = vpop.f32.mrb[22].mxu0  ;;  %3088 = vmatprep.mubr.msk.f32.mxu1 %vm655_vm1, %v1423_v39 }
 0x2d3   : > { %v1426_v37 = vmul.f32 %v3067_v40, %v836_v23  ;;  %v1394_v7 = vpop.f32.mrb[23].mxu0  ;;  %3089 = vmatmul.mubr.msk.f32.gmra.mrb[40].mxu1 %vm655_vm1, %v1424_v45 }
 0x2d4   : > { %v1425_v8 = vmul.f32 %v1394_v7, %v831_v48 }
 0x2d6   : > { %v3070_v38 = vpop.f32.mrb[24].mxu0  ;;  %3091 = vmatprep.mubr.msk.f32.mxu1 %vm655_vm1, %v1425_v8 }
 0x2d7   : > { %v1428_v9 = vmul.f32 %v3070_v38, %v846_v49  ;;  %v1404_v11 = vpop.f32.mrb[25].mxu0  ;;  %3092 = vmatmul.mubr.msk.f32.gmra.mrb[42].mxu1 %vm655_vm1, %v1426_v37 }
 0x2d8   : > { %v1427_v51 = vmul.f32 %v1404_v11, %v841_v50 }
 0x2da   : > { %3094 = vmatprep.mubr.msk.f32.mxu1 %vm655_vm1, %v1427_v51  ;;  %v3889_v41 = vpop.f32.mrb[26].mxu0 }
 0x2db   : > { %3095 = vmatmul.mubr.msk.f32.gmra.mrb[44].mxu1 %vm655_vm1, %v1428_v9  ;;  %v3101_v52 = vpop.f32.mrb[27].mxu0  ;;  %v1771_v6 = vrot.slane %v3889_v41, 2  ;;  %v1774_v55 = vrot.slane %v3889_v41, 5 }
 0x2dc   : > { %3160 = vmatprep.mubr.msk.f32.mxu1 %vm3370_vm0, %v4174_v1 }
 0x392   : > { %v3894_v14 = vpop.f32.mrb[30].mxu1 }
 0x393   : > { %v1698_v53 = vsel %vm1696_vm2, %v3894_v14, -inf  ;;  %v3898_v10 = vpop.f32.mrb[31].mxu1 }
 0x394   : > { %v1697_v12 = vsel %vm1696_vm2, %v3898_v10, -inf }
 0x395   : > { %v1699_v42 = vmax.f32 %v1697_v12, %v1698_v53 }
 0x396   : > { %v3902_v0 = vpop.f32.mrb[32].mxu1 }
 0x397   : > { %v1700_v13 = vrot.slane %v1699_v42, 4  ;;  %v1707_v43 = vsel %vm1696_vm2, %v3902_v0, -inf  ;;  %v3906_v15 = vpop.f32.mrb[33].mxu1 }
 0x398   : > { %v1706_v17 = vsel %vm1696_vm2, %v3906_v15, -inf }
 0x399   : > { %v1701_v44 = vmax.f32 %v1699_v42, %v1700_v13  ;;  %v1708_v18 = vmax.f32 %v1706_v17, %v1707_v43 }
 0x39a   : > { %v3910_v20 = vpop.f32.mrb[34].mxu1 }
 0x39b   : > { %v1702_v45 = vrot.slane %v1701_v44, 2  ;;  %v1709_v23 = vrot.slane %v1708_v18, 4  ;;  %v1716_v46 = vsel %vm1696_vm2, %v3910_v20, -inf  ;;  %v3914_v39 = vpop.f32.mrb[35].mxu1 }
 0x39c   : > { %v1715_v48 = vsel %vm1696_vm2, %v3914_v39, -inf }
 0x39d   : > { %v1703_v40 = vmax.f32 %v1701_v44, %v1702_v45  ;;  %v1710_v37 = vmax.f32 %v1708_v18, %v1709_v23  ;;  %v1717_v49 = vmax.f32 %v1715_v48, %v1716_v46  ;;  %v1770_v23 = vrot.slane %v3889_v41, 1 }
 0x39e   : > { %v3918_v7 = vpop.f32.mrb[36].mxu1 }
 0x39f   : > { %v1704_v8 = vrot.slane %v1703_v40, 1  ;;  %v1711_v50 = vrot.slane %v1710_v37, 2  ;;  %v1718_v38 = vrot.slane %v1717_v49, 4  ;;  %v1725_v9 = vsel %vm1696_vm2, %v3918_v7, -inf  ;;  %v3922_v11 = vpop.f32.mrb[37].mxu1 }
 0x3a0   : > { %v1724_v51 = vsel %vm1696_vm2, %v3922_v11, -inf }
 0x3a1   : > { %v1705_v52 = vmax.f32 %v1703_v40, %v1704_v8  ;;  %v1712_v53 = vmax.f32 %v1710_v37, %v1711_v50  ;;  %v1719_v12 = vmax.f32 %v1717_v49, %v1718_v38  ;;  %v1726_v42 = vmax.f32 %v1724_v51, %v1725_v9 }
 0x3a2   : > { %v3926_v13 = vpop.f32.mrb[38].mxu1 }
 0x3a3   : > { %v1785_v43 = vmax.f32 %v1705_v52, %v3889_v41  ;;  %v1713_v17 = vrot.slane %v1712_v53, 1  ;;  %v1720_v44 = vrot.slane %v1719_v12, 2  ;;  %v1727_v18 = vrot.slane %v1726_v42, 4  ;;  %v3929_v45 = vpop.f32.mrb[39].mxu1 }
 0x3a4   : > { %v1734_v46 = vsel %vm1696_vm2, %v3926_v13, -inf  ;;  %v1733_v48 = vsel %vm1696_vm2, %v3929_v45, -inf }
 0x3a5   : > { %v1714_v40 = vmax.f32 %v1712_v53, %v1713_v17  ;;  %v1721_v37 = vmax.f32 %v1719_v12, %v1720_v44  ;;  %v1728_v49 = vmax.f32 %v1726_v42, %v1727_v18  ;;  %v1735_v8 = vmax.f32 %v1733_v48, %v1734_v46 }
 0x3a6   : > { %v3936_v50 = vpop.f32.mrb[40].mxu1  ;;  %v1772_v44 = vrot.slane %v3889_v41, 3 }
 0x3a7   : > { %v1786_v38 = vmax.f32 %v1714_v40, %v1770_v23  ;;  %v1722_v9 = vrot.slane %v1721_v37, 1  ;;  %v1729_v51 = vrot.slane %v1728_v49, 2  ;;  %v1736_v52 = vrot.slane %v1735_v8, 4  ;;  %v3938_v1 = vpop.f32.mrb[41].mxu1 }
 0x3a8   : > { %v1743_v5 = vsel %vm1696_vm2, %v3936_v50, -inf  ;;  %v1742_v4 = vsel %vm1696_vm2, %v3938_v1, -inf }
 0x3a9   : > { %v1801_v53 = vrot.slane %v1786_v38, 7  ;;  %v1723_v12 = vmax.f32 %v1721_v37, %v1722_v9  ;;  %v1730_v42 = vmax.f32 %v1728_v49, %v1729_v51  ;;  %v1737_v17 = vmax.f32 %v1735_v8, %v1736_v52 }
 0x3aa   : > { %v1744_v18 = vmax.f32 %v1742_v4, %v1743_v5  ;;  %v3946_v23 = vpop.f32.mrb[42].mxu1  ;;  %v1773_v5 = vrot.slane %v3889_v41, 4 }
 0x3ab   : > { %v1787_v46 = vmax.f32 %v1723_v12, %v1771_v6  ;;  %v1731_v48 = vrot.slane %v1730_v42, 1  ;;  %v1738_v40 = vrot.slane %v1737_v17, 2  ;;  %v1752_v3 = vsel %vm1696_vm2, %v3946_v23, -inf  ;;  %v3950_v2 = vpop.f32.mrb[43].mxu1 }
 0x3ac   : > { %v1745_v63 = vrot.slane %v1744_v18, 4  ;;  %v1751_v38 = vsel %vm1696_vm2, %v3950_v2, -inf  ;;  %v1803_v37 = vsel %vm1802_vm3, %v1801_v53, %v1785_v43 }
 0x3ad   : > { %v1804_v49 = vrot.slane %v1787_v46, 6  ;;  %v1732_v8 = vmax.f32 %v1730_v42, %v1731_v48  ;;  %v1739_v9 = vmax.f32 %v1737_v17, %v1738_v40  ;;  %v1753_v4 = vmax.f32 %v1751_v38, %v1752_v3 }
 0x3ae   : > { %v1746_v6 = vmax.f32 %v1744_v18, %v1745_v63  ;;  %v3955_v51 = vpop.f32.mrb[44].mxu1 }
 0x3af   : > { %v1788_v52 = vmax.f32 %v1732_v8, %v1772_v44  ;;  %v1740_v12 = vrot.slane %v1739_v9, 1  ;;  %v1754_v62 = vrot.slane %v1753_v4, 4  ;;  %v1761_v61 = vsel %vm1696_vm2, %v3955_v51, -inf  ;;  %v3959_v60 = vpop.f32.mrb[45].mxu1 }
 0x3b0   : > { %v1747_v59 = vrot.slane %v1746_v6, 2  ;;  %v1760_v43 = vsel %vm1696_vm2, %v3959_v60, -inf  ;;  %v1806_v53 = vsel %vm1805_vm4, %v1804_v49, %v1803_v37 }
 0x3b1   : > { %v1807_v3 = vrot.slane %v1788_v52, 5  ;;  %v1741_v42 = vmax.f32 %v1739_v9, %v1740_v12  ;;  %v1755_v17 = vmax.f32 %v1753_v4, %v1754_v62  ;;  %v1762_v63 = vmax.f32 %v1760_v43, %v1761_v61 }
 0x3b2   : > { %v1748_v18 = vmax.f32 %v1746_v6, %v1747_v59  ;;  %v1775_v59 = vrot.slane %v3889_v41, 6  ;;  %v1776_v43 = vrot.slane %v3889_v41, 7 }
 0x3b3   : > { %v1789_v46 = vmax.f32 %v1741_v42, %v1773_v5  ;;  %v1756_v44 = vrot.slane %v1755_v17, 2  ;;  %v1763_v48 = vrot.slane %v1762_v63, 4  ;;  %v1809_v40 = vsel %vm1808_vm5, %v1807_v3, %v1806_v53 }
 0x3b4   : > { %v1749_v38 = vrot.slane %v1748_v18, 1 }
 0x3b5   : > { %v1810_v8 = vrot.slane %v1789_v46, 4  ;;  %v1757_v58 = vmax.f32 %v1755_v17, %v1756_v44  ;;  %v1764_v57 = vmax.f32 %v1762_v63, %v1763_v48 }
 0x3b6   : > { %v1750_v56 = vmax.f32 %v1748_v18, %v1749_v38 }
 0x3b7   : > { %v1758_v47 = vrot.slane %v1757_v58, 1  ;;  %v1765_v37 = vrot.slane %v1764_v57, 2  ;;  %v1812_v49 = vsel %vm1811_vm6, %v1810_v8, %v1809_v40 }
 0x3b8   : > { %v1790_v52 = vmax.f32 %v1750_v56, %v1774_v55  ;;  %v3970_v55 = vld [vmem:[%s4166_s10] sm:$0x3]  ;;  %v4191_v56 = vmov 0.0  }
 0x3b9   : > { %v1759_v9 = vmax.f32 %v1757_v58, %v1758_v47  ;;  %v1766_v62 = vmax.f32 %v1764_v57, %v1765_v37 }
 0x3ba   : > { %v1813_v61 = vrot.slane %v1790_v52, 3 }
 0x3bb   : > { %v1767_v4 = vrot.slane %v1766_v62, 1  ;;  %v1791_v5 = vmax.f32 %v1759_v9, %v1775_v59  ;;  %v4192_v59 = vmov 0.0|0.0  }
 0x3bc   : > { %v1815_v6 = vsel %vm1814_vm7, %v1813_v61, %v1812_v49 }
 0x3bd   : > { %v1768_v12 = vmax.f32 %v1766_v62, %v1767_v4  ;;  %v1816_v53 = vrot.slane %v1791_v5, 2 }
 0x3bf   : > { %v1792_v3 = vmax.f32 %v1768_v12, %v1776_v43  ;;  %v1818_v42 = vsel %vm1817_vm8, %v1816_v53, %v1815_v6 }
 0x3c1   : > { %v1819_v17 = vrot.slane %v1792_v3, 1 }
 0x3c3   : > { %v1821_v63 = vsel %vm1820_vm9, %v1819_v17, %v1818_v42 }
 0x3c4   : > { %3102 = vmatprep.subr.mxu0 %v1821_v63  ;;  %v2016_v47 = vsub.f32 %v3889_v41, %v1821_v63 }
 0x3c5   : > { %3103 = vmatpush3.msra.mxu0 %v1821_v63 }
 0x3c6   : > { %3105 = vmatmul.mubr.msk.f32.vlgmr.msra.gmra.mrb[28].mxu0 %vm655_vm1, %v3701_v16  ;;  %3189 = vmatprep.subr.mxu0 %v4191_v56  ;;  %v2017_v16 = vmul.f32 1.442695, %v2016_v47 }
 0x3c7   : > { %3107 = vmatprep.mubr.msk.f32.mxu0 %vm655_vm1, %v3707_v19  ;;  %3190 = vmatpush3.msk.msra.mxu0 %vm2139_vm10, %v3970_v55 }
 0x3c8   : > { %3229 = vmatprep.subr.mxu0 %v4191_v56  ;;  %3324 = vpow2.f32 %v2017_v16  ;;  %v4051_v16 = vld [vmem:[%s4164_s8] ss:$0 sm:$0xff] }
 0x3ca   : > { %3108 = vmatmul.mubr.msk.f32.gmra.mrb[30].mxu0 %vm655_vm1, %v3719_v22 }
 0x3cb   : > { %3110 = vmatprep.mubr.msk.f32.mxu0 %vm655_vm1, %v3724_v24 }
 0x3ce   : > { %3111 = vmatmul.mubr.msk.f32.gmra.mrb[32].mxu0 %vm655_vm1, %v3733_v25 }
 0x3cf   : > { %3113 = vmatprep.mubr.msk.f32.mxu0 %vm655_vm1, %v3738_v26 }
 0x3d2   : > { %3114 = vmatmul.mubr.msk.f32.gmra.mrb[34].mxu0 %vm655_vm1, %v3747_v27  ;;  %v4008_v19 = vpop.eup %3324 }
 0x3d3   : > { %3116 = vmatprep.mubr.msk.f32.mxu0 %vm655_vm1, %v3752_v28 }
 0x3d6   : > { %3117 = vmatmul.mubr.msk.f32.gmra.mrb[36].mxu0 %vm655_vm1, %v3761_v29 }
 0x3d7   : > { %3119 = vmatprep.mubr.msk.f32.mxu0 %vm655_vm1, %v3766_v31 }
 0x3da   : > { %3120 = vmatmul.mubr.msk.f32.gmra.mrb[38].mxu0 %vm655_vm1, %v3775_v32 }
 0x3db   : > { %3122 = vmatprep.mubr.msk.f32.mxu0 %vm655_vm1, %v3780_v33 }
 0x3de   : > { %3123 = vmatmul.mubr.msk.f32.gmra.mrb[40].mxu0 %vm655_vm1, %v3789_v34 }
 0x3df   : > { %3125 = vmatprep.mubr.msk.f32.mxu0 %vm655_vm1, %v3794_v35 }
 0x3e2   : > { %3126 = vmatmul.mubr.msk.f32.gmra.mrb[42].mxu0 %vm655_vm1, %v3803_v36 }
 0x3e3   : > { %3191 = vmatprep.mubr.msk.f32.mxu0 %vm3370_vm0, %v4191_v56 }
 0x3e6   : > { %3192 = vmatmul.mubr.msk.f32.vlgmr.msra.gmra.mrb[44].mxu0 %vm1696_vm2, %v4008_v19 }
 0x3e7   : > { %3230 = vmatpush3.msk.msra.mxu0 %vm2139_vm10, %v3970_v55  ;;  %3231 = vmatprep.mubr.msk.f32.mxu0 %vm3370_vm0, %v4191_v56 }
 0x3e8   : > { %3234 = vmatprep.subr.mxu0 %v4191_v56 }
 0x499   : > { %v3106_v22 = vpop.f32.mrb[28].mxu0 }
 0x49a   : > { %v1969_v24 = vsub.f32 %v3894_v14, %v3106_v22  ;;  %v1889_v25 = vpop.f32.mrb[29].mxu0 }
 0x49b   : > { %v1968_v26 = vsub.f32 %v3898_v10, %v1889_v25 }
 0x49c   : > { %v1986_v27 = vmul.f32 1.442695, %v1969_v24 }
 0x49d   : > { %v1984_v28 = vmul.f32 1.442695, %v1968_v26  ;;  %v3109_v29 = vpop.f32.mrb[30].mxu0 }
 0x49e   : > { %3326 = vpow2.f32 %v1986_v27  ;;  %v1971_v31 = vsub.f32 %v3902_v0, %v3109_v29  ;;  %v1899_v32 = vpop.f32.mrb[31].mxu0 }
 0x49f   : > { %3328 = vpow2.f32 %v1984_v28  ;;  %v1970_v33 = vsub.f32 %v3906_v15, %v1899_v32  ;;  %v1216_v28 = vadd.f32 %v4051_v16, %v3712_v21 }
 0x4a0   : > { %v1990_v34 = vmul.f32 1.442695, %v1971_v31 }
 0x4a1   : > { %v1988_v35 = vmul.f32 1.442695, %v1970_v33  ;;  %v3112_v36 = vpop.f32.mrb[32].mxu0 }
 0x4a2   : > { %3330 = vpow2.f32 %v1990_v34  ;;  %v1973_v57 = vsub.f32 %v3910_v20, %v3112_v36  ;;  %v1909_v58 = vpop.f32.mrb[33].mxu0 }
 0x4a3   : > { %3332 = vpow2.f32 %v1988_v35  ;;  %v1972_v41 = vsub.f32 %v3914_v39, %v1909_v58 }
 0x4a4   : > { %v1994_v14 = vmul.f32 1.442695, %v1973_v57 }
 0x4a5   : > { %v1992_v10 = vmul.f32 1.442695, %v1972_v41  ;;  %v3115_v18 = vpop.f32.mrb[34].mxu0 }
 0x4a6   : > { %3334 = vpow2.f32 %v1994_v14  ;;  %v1975_v0 = vsub.f32 %v3918_v7, %v3115_v18  ;;  %v1919_v46 = vpop.f32.mrb[35].mxu0 }
 0x4a7   : > { %3336 = vpow2.f32 %v1992_v10  ;;  %v1974_v15 = vsub.f32 %v3922_v11, %v1919_v46  ;;  %v927_v46 = vadd.f32 %v3820_v54, %v4051_v16  ;;  %v4196_v54 = vld [vmem:[#allocation5_spill] sm:$0xff] }
 0x4a8   : > { %v4025_v44 = vpop.eup %3326  ;;  %v1998_v48 = vmul.f32 1.442695, %v1975_v0 }
 0x4a9   : > { %v4027_v40 = vpop.eup %3328  ;;  %v1996_v20 = vmul.f32 1.442695, %v1974_v15  ;;  %v3118_v38 = vpop.f32.mrb[36].mxu0  ;;  %v4193_v15 = vld [vmem:[#allocation2_spill] sm:$0xff] }
 0x4aa   : > { %3338 = vpow2.f32 %v1998_v48  ;;  %v1977_v39 = vsub.f32 %v3926_v13, %v3118_v38  ;;  %v1929_v8 = vpop.f32.mrb[37].mxu0  ;;  %v3264_v37 = vpack.c.bf16 %v4025_v44, %v4027_v40 }
 0x4ab   : > { %3340 = vpow2.f32 %v1996_v20  ;;  %v1976_v7 = vsub.f32 %v3929_v45, %v1929_v8 }
 0x4ac   : > { %v4033_v49 = vpop.eup %3330  ;;  %v2002_v11 = vmul.f32 1.442695, %v1977_v39  ;;  %3265 = vmatpush3.bf16.msra.mxu1 %v3264_v37  ;;  %v4194_v39 = vld [vmem:[#allocation3_spill] sm:$0xff]  ;;  %v4195_v37 = vld [vmem:[#allocation4_spill] sm:$0xff] }
 0x4ad   : > { %v4035_v52 = vpop.eup %3332  ;;  %v2000_v9 = vmul.f32 1.442695, %v1976_v7  ;;  %v3121_v62 = vpop.f32.mrb[38].mxu0  ;;  %3266 = vmatprep.subr.bf16.mxu1 %v4192_v59  ;;  %v937_v8 = vadd.f32 %v4194_v39, %v4051_v16  ;;  %v932_v7 = vadd.f32 %v4051_v16, %v4195_v37 }
 0x4ae   : > { %3342 = vpow2.f32 %v2002_v11  ;;  %v1979_v13 = vsub.f32 %v3936_v50, %v3121_v62  ;;  %v1939_v61 = vpop.f32.mrb[39].mxu0  ;;  %v3267_v4 = vpack.c.bf16 %v4033_v49, %v4035_v52  ;;  %v947_v62 = vadd.f32 %v4196_v54, %v4051_v16 }
 0x4af   : > { %3344 = vpow2.f32 %v2000_v9  ;;  %v1978_v45 = vsub.f32 %v3938_v1, %v1939_v61 }
 0x4b0   : > { %v4042_v5 = vpop.eup %3334  ;;  %v2006_v6 = vmul.f32 1.442695, %v1979_v13  ;;  %3268 = vmatpush3.bf16.msra.mxu1 %v3267_v4  ;;  %v4197_v13 = vld [vmem:[#allocation6_spill] sm:$0xff] }
 0x4b1   : > { %v3337_v12 = vpop.eup %3336  ;;  %v2004_v43 = vmul.f32 1.442695, %v1978_v45  ;;  %v3124_v53 = vpop.f32.mrb[40].mxu0  ;;  %3269 = vmatprep.subr.bf16.mxu1 %v4192_v59  ;;  %v942_v61 = vadd.f32 %v4051_v16, %v4197_v13 }
 0x4b2   : > { %3346 = vpow2.f32 %v2006_v6  ;;  %v1981_v3 = vsub.f32 %v3946_v23, %v3124_v53  ;;  %v1949_v50 = vpop.f32.mrb[41].mxu0  ;;  %v3270_v42 = vpack.c.bf16 %v4042_v5, %v3337_v12  ;;  %v4198_v53 = vld [vmem:[#allocation7_spill] sm:$0xff] }
 0x4b3   : > { %3348 = vpow2.f32 %v2004_v43  ;;  %v1980_v17 = vsub.f32 %v3950_v2, %v1949_v50  ;;  %v4199_v50 = vld [vmem:[#allocation8_spill] sm:$0xff] }
 0x4b4   : > { %v3339_v63 = vpop.eup %3338  ;;  %v2010_v1 = vmul.f32 1.442695, %v1981_v3  ;;  %3271 = vmatpush3.bf16.msra.mxu1 %v3270_v42  ;;  %v957_v3 = vadd.f32 %v4198_v53, %v4051_v16  ;;  %v952_v42 = vadd.f32 %v4051_v16, %v4199_v50 }
 0x4b5   : > { %v3341_v47 = vpop.eup %3340  ;;  %v2008_v22 = vmul.f32 1.442695, %v1980_v17  ;;  %v3127_v24 = vpop.f32.mrb[42].mxu0  ;;  %3272 = vmatprep.subr.bf16.mxu1 %v4192_v59 }
 0x4b6   : > { %3350 = vpow2.f32 %v2010_v1  ;;  %v1983_v23 = vsub.f32 %v3955_v51, %v3127_v24  ;;  %v1959_v25 = vpop.f32.mrb[43].mxu0  ;;  %v3273_v26 = vpack.c.bf16 %v3339_v63, %v3341_v47  ;;  %v4200_v24 = vld [vmem:[#allocation9_spill] sm:$0xff] }
 0x4b7   : > { %3352 = vpow2.f32 %v2008_v22  ;;  %v1982_v2 = vsub.f32 %v3959_v60, %v1959_v25  ;;  %v4201_v25 = vld [vmem:[#allocation10_spill] sm:$0xff] }
 0x4b8   : > { %v3343_v27 = vpop.eup %3342  ;;  %v2014_v29 = vmul.f32 1.442695, %v1983_v23  ;;  %3274 = vmatpush3.bf16.msra.mxu1 %v3273_v26  ;;  %v967_v23 = vadd.f32 %v4200_v24, %v4051_v16  ;;  %v962_v26 = vadd.f32 %v4051_v16, %v4201_v25 }
 0x4b9   : > { %v3345_v31 = vpop.eup %3344  ;;  %v2012_v32 = vmul.f32 1.442695, %v1982_v2  ;;  %v2357_v33 = vpop.f32.mrb[44].mxu0  ;;  %3275 = vmatprep.subr.bf16.mxu1 %v4192_v59 }
 0x4ba   : > { %3354 = vpow2.f32 %v2014_v29  ;;  %v4059_v34 = vmul.f32 %v2357_v33, %v1216_v28  ;;  %v3193_v51 = vpop.f32.mrb[45].mxu0  ;;  %v3276_v35 = vpack.c.bf16 %v3343_v27, %v3345_v31  ;;  %v4203_v33 = vld [vmem:[#allocation12_spill] sm:$0xff] }
 0x4bb   : > { %3356 = vpow2.f32 %v2012_v32  ;;  %v972_v51 = vadd.f32 %v4051_v16, %v4203_v33 }
 0x4bc   : > { %v3347_v36 = vpop.eup %3346  ;;  %3277 = vmatpush3.bf16.msra.mxu1 %v3276_v35 }
 0x4bd   : > { %v3349_v60 = vpop.eup %3348  ;;  %3278 = vmatprep.subr.bf16.mxu1 %v4192_v59 }
 0x4be   : > { %v3279_v57 = vpack.c.bf16 %v3347_v36, %v3349_v60 }
 0x4c0   : > { %v3351_v21 = vpop.eup %3350  ;;  %3280 = vmatpush3.bf16.msra.mxu1 %v3279_v57 }
 0x4c1   : > { %v3353_v58 = vpop.eup %3352  ;;  %3281 = vmatprep.subr.bf16.mxu1 %v4192_v59 }
 0x4c2   : > { %v3282_v41 = vpack.c.bf16 %v3351_v21, %v3353_v58 }
 0x4c4   : > { %v3355_v14 = vpop.eup %3354  ;;  %3283 = vmatpush3.bf16.msra.mxu1 %v3282_v41 }
 0x4c5   : > { %v3357_v10 = vpop.eup %3356  ;;  %3284 = vmatprep.subr.bf16.mxu1 %v4192_v59 }
 0x4c6   : > { %v3285_v18 = vpack.c.bf16 %v3355_v14, %v3357_v10 }
 0x4c8   : > { %3286 = vmatpush3.bf16.msra.mxu1 %v3285_v18 }
 0x4c9   : > { %3163 = vmatprep.subr.msk.mxu1 %vm2139_vm10, %v3970_v55 }
 0x4cb   : > { %3161 = vmatmul.mubr.f32.vlgmr.msra.gmra.mrb[46].mxu1 %v3554_v30 }
 0x4cc   : > { %3165 = vmatprep.mubr.msk.f32.mxu1 %vm1696_vm2, %v4027_v40  ;;  %3164 = vmatpush3.msk.msra.mxu1 %vm2139_vm10, %v3970_v55 }
 0x4cd   : > { %3287 = vmatprep.subr.bf16.mxu1 %v4192_v59 }
 0x4cf   : > { %3166 = vmatmul.mubr.msk.f32.vlgmr.msra.gmra.mrb[48].mxu1 %vm1696_vm2, %v4025_v44  ;;  %v922_v44 = vadd.f32 %v4051_v16, %v4193_v15  ;;  %v4206_v15 = vld [vmem:[#allocation15_spill] sm:$0xff] }
 0x4d0   : > { %3168 = vmatprep.mubr.msk.f32.mxu1 %vm1696_vm2, %v4035_v52 }
 0x4d3   : > { %3169 = vmatmul.mubr.msk.f32.gmra.mrb[50].mxu1 %vm1696_vm2, %v4033_v49 }
 0x4d4   : > { %3171 = vmatprep.mubr.msk.f32.mxu1 %vm1696_vm2, %v3337_v12 }
 0x4d7   : > { %3172 = vmatmul.mubr.msk.f32.gmra.mrb[52].mxu1 %vm1696_vm2, %v4042_v5 }
 0x4d8   : > { %3174 = vmatprep.mubr.msk.f32.mxu1 %vm1696_vm2, %v3341_v47 }
 0x4db   : > { %3175 = vmatmul.mubr.msk.f32.gmra.mrb[54].mxu1 %vm1696_vm2, %v3339_v63 }
 0x4dc   : > { %3177 = vmatprep.mubr.msk.f32.mxu1 %vm1696_vm2, %v3345_v31  ;;  %v4202_v31 = vld [vmem:[#allocation11_spill] sm:$0xff] }
 0x4dd   : > { %v977_v32 = vadd.f32 %v4202_v31, %v4051_v16 }
 0x4df   : > { %3178 = vmatmul.mubr.msk.f32.gmra.mrb[56].mxu1 %vm1696_vm2, %v3343_v27 }
 0x4e0   : > { %3180 = vmatprep.mubr.msk.f32.mxu1 %vm1696_vm2, %v3349_v60 }
 0x4e3   : > { %3181 = vmatmul.mubr.msk.f32.gmra.mrb[58].mxu1 %vm1696_vm2, %v3347_v36 }
 0x4e4   : > { %3183 = vmatprep.mubr.msk.f32.mxu1 %vm1696_vm2, %v3353_v58  ;;  %v4204_v58 = vld [vmem:[#allocation13_spill] sm:$0xff] }
 0x4e5   : > { %v987_v41 = vadd.f32 %v4204_v58, %v4051_v16 }
 0x4e7   : > { %3184 = vmatmul.mubr.msk.f32.gmra.mrb[60].mxu1 %vm1696_vm2, %v3351_v21 }
 0x4e8   : > { %3186 = vmatprep.mubr.msk.f32.mxu1 %vm1696_vm2, %v3357_v10 }
 0x4eb   : > { %3187 = vmatmul.mubr.msk.f32.gmra.mrb[62].mxu1 %vm1696_vm2, %v3355_v14  ;;  %v4205_v14 = vld [vmem:[#allocation14_spill] sm:$0xff] }
 0x4ec   : > { %3226 = vmatprep.mubr.msk.f32.mxu1 %vm3370_vm0, %v4191_v56  ;;  %v982_v10 = vadd.f32 %v4051_v16, %v4205_v14 }
 0x59e   : > { %v2085_v30 = vpop.f32.mrb[46].mxu1 }
 0x59f   : > { %v2086_v55 = vadd.f32 %v4008_v19, %v2085_v30  ;;  %v3162_v0 = vpop.f32.mrb[47].mxu1 }
 0x5a1   : > { %3358 = vrcp.f32 %v2086_v55 }
 0x5a2   : > { %v3167_v48 = vpop.f32.mrb[48].mxu1 }
 0x5a3   : > { %v2362_v40 = vmul.f32 %v3167_v48, %v927_v46  ;;  %v2209_v20 = vpop.f32.mrb[49].mxu1  ;;  %v4207_v48 = vld [vmem:[#allocation16_spill] sm:$0xff] }
 0x5a4   : > { %v2361_v38 = vmul.f32 %v2209_v20, %v922_v44  ;;  %v997_v44 = vadd.f32 %v4206_v15, %v4051_v16 }
 0x5a6   : > { %v3288_v49 = vpack.c.bf16 %v2362_v40, %v2361_v38  ;;  %v3170_v19 = vpop.f32.mrb[50].mxu1  ;;  %v992_v40 = vadd.f32 %v4051_v16, %v4207_v48  ;;  %v536_v16 = vld [vmem:[%s4167_s11] sm:$0xff] }
 0x5a7   : > { %v2364_v11 = vmul.f32 %v3170_v19, %v937_v8  ;;  %v2219_v52 = vpop.f32.mrb[51].mxu1 }
 0x5a8   : > { %v2363_v9 = vmul.f32 %v2219_v52, %v932_v7  ;;  %3289 = vmatpush3.bf16.msra.mxu1 %v3288_v49  ;;  %v3360_v49 = vld [vmem:[%s4169_s13] sm:$0xff] }
 0x5a9   : > { %3290 = vmatprep.subr.bf16.mxu1 %v4192_v59 }
 0x5aa   : > { %v3291_v4 = vpack.c.bf16 %v2364_v11, %v2363_v9  ;;  %v3173_v45 = vpop.f32.mrb[52].mxu1 }
 0x5ab   : > { %v3359_v5 = vpop.eup %3358  ;;  %v2366_v6 = vmul.f32 %v3173_v45, %v947_v62  ;;  %v2229_v12 = vpop.f32.mrb[53].mxu1 }
 0x5ac   : > { %v2365_v43 = vmul.f32 %v2229_v12, %v942_v61  ;;  %3292 = vmatpush3.bf16.msra.mxu1 %v3291_v4  ;;  %3232 = vmatmul.mubr.msk.f32.vlgmr.msra.gmra.mrb[46].mxu0 %vm1696_vm2, %v3359_v5 }
 0x5ad   : > { %3293 = vmatprep.subr.bf16.mxu1 %v4192_v59  ;;  %3236 = vmatprep.mubr.msk.f32.mxu0 %vm3370_vm0, %v4191_v56 }
 0x5ae   : > { %v3294_v17 = vpack.c.bf16 %v2366_v6, %v2365_v43  ;;  %v3176_v63 = vpop.f32.mrb[54].mxu1  ;;  %3235 = vmatpush3.msra.mxu0 %v536_v16 }
 0x5af   : > { %v2368_v1 = vmul.f32 %v3176_v63, %v957_v3  ;;  %v2239_v47 = vpop.f32.mrb[55].mxu1 }
 0x5b0   : > { %v2367_v22 = vmul.f32 %v2239_v47, %v952_v42  ;;  %3295 = vmatpush3.bf16.msra.mxu1 %v3294_v17 }
 0x5b1   : > { %3296 = vmatprep.subr.bf16.mxu1 %v4192_v59 }
 0x5b2   : > { %v3297_v2 = vpack.c.bf16 %v2368_v1, %v2367_v22  ;;  %v3179_v27 = vpop.f32.mrb[56].mxu1 }
 0x5b3   : > { %v2370_v56 = vmul.f32 %v3179_v27, %v967_v23  ;;  %v2249_v28 = vpop.f32.mrb[57].mxu1 }
 0x5b4   : > { %v2369_v29 = vmul.f32 %v2249_v28, %v962_v26  ;;  %3298 = vmatpush3.bf16.msra.mxu1 %v3297_v2 }
 0x5b5   : > { %3299 = vmatprep.subr.bf16.mxu1 %v4192_v59 }
 0x5b6   : > { %v3300_v35 = vpack.c.bf16 %v2370_v56, %v2369_v29  ;;  %v3182_v36 = vpop.f32.mrb[58].mxu1 }
 0x5b7   : > { %v2372_v60 = vmul.f32 %v3182_v36, %v977_v32  ;;  %v2259_v57 = vpop.f32.mrb[59].mxu1 }
 0x5b8   : > { %v2371_v21 = vmul.f32 %v2259_v57, %v972_v51  ;;  %3301 = vmatpush3.bf16.msra.mxu1 %v3300_v35 }
 0x5b9   : > { %3302 = vmatprep.subr.bf16.mxu1 %v4192_v59 }
 0x5ba   : > { %v3303_v18 = vpack.c.bf16 %v2372_v60, %v2371_v21  ;;  %v3185_v30 = vpop.f32.mrb[60].mxu1 }
 0x5bb   : > { %v2374_v55 = vmul.f32 %v3185_v30, %v987_v41  ;;  %v2269_v0 = vpop.f32.mrb[61].mxu1 }
 0x5bc   : > { %v2373_v46 = vmul.f32 %v2269_v0, %v982_v10  ;;  %3304 = vmatpush3.bf16.msra.mxu1 %v3303_v18 }
 0x5bd   : > { %3305 = vmatprep.subr.bf16.mxu1 %v4192_v59 }
 0x5be   : > { %v3306_v20 = vpack.c.bf16 %v2374_v55, %v2373_v46  ;;  %v3188_v38 = vpop.f32.mrb[62].mxu1 }
 0x5bf   : > { %v2376_v39 = vmul.f32 %v3188_v38, %v997_v44  ;;  %v2279_v8 = vpop.f32.mrb[63].mxu1 }
 0x5c0   : > { %v2375_v37 = vmul.f32 %v2279_v8, %v992_v40  ;;  %3307 = vmatpush3.bf16.msra.mxu1 %v3306_v20 }
 0x5c1   : > { %3308 = vmatprep.subr.bf16.mxu1 %v4192_v59  ;;  %v2772_v59 = vld [vmem:[%s4168_s12] ss:$0 sm:$0xff] }
 0x5c2   : > { %v3309_v7 = vpack.c.bf16 %v2376_v39, %v2375_v37 }
 0x5c4   : > { %3310 = vmatpush3.bf16.msra.mxu1 %v3309_v7 }
 0x5c7   : > { %3227 = vmatmul.mubr.f32.vlgmr.msra.gmra.mrb[64].mxu1 %v3360_v49 }
 0x67f   : > { %v2517_v19 = vpop.f32.mrb[46].mxu0 }
 0x680   : > { %v3233_v11 = vpop.f32.mrb[47].mxu0 }
 0x69a   : > { %v2444_v52 = vpop.f32.mrb[64].mxu1 }
 0x69b   : > { %v2445_v9 = vadd.f32 %v2444_v52, %v4059_v34  ;;  %v3228_v54 = vpop.f32.mrb[65].mxu1 }
 0x69d   : > { %v2521_v62 = vmul.f32 %v2517_v19, %v2445_v9 }
 0x69f   : > { %3237 = vmatmul.mubr.msk.f32.vlgmr.msra.gmra.mrb[48].mxu0 %vm655_vm1, %v2521_v62 }
 0x772   : > { %v2597_v13 = vpop.f32.mrb[48].mxu0 }
 0x773   : > { %v2598_v61 = vadd.f32 %v2772_v59, %v2597_v13  ;;  %v3238_v4 = vpop.f32.mrb[49].mxu0 }
 0x775   : > { %2601 = vst.msk [vmem:[%s494_s27] sm:$0xff] %vm655_vm1, %v2598_v61 }
 0x776 PF: > { %s25_s18 = sadd.s32 1, %s3367_s18  }
 0x777   : > { %p22_p5 = scmp.ge.s32.totalorder %s25_s18, 4  }
 0x779   :  { %24 = sbr.rel (!%p22_p5) target bundleno = 1 (0x1), region = 110 }

</bundles_post_ra>
